<compile_context>
chip_gen: v6e
topology: v6e:2x2x1
jax: 0.10.0
libtpu: 0.0.40
codegen_flags: <defaults>
</compile_context>

<pallas_src>
import functools

import jax
import jax.numpy as jnp
from jax import lax
from jax.experimental import pallas as pl
from jax.experimental.pallas import tpu as pltpu

EPS = 1e-5
LANE = 128


def _batchnorm(x, g, b):
    # BatchNorm1d training mode: per-feature stats over the batch axis, biased var.
    mean = jnp.mean(x, axis=0, keepdims=True)
    var = jnp.mean((x - mean) ** 2, axis=0, keepdims=True)
    inv = lax.rsqrt(var + EPS)
    return (x - mean) * inv * g + b


def _masked_layernorm(x, g, b, mask, true_dim):
    # LayerNorm over the last axis, ignoring padded lanes (mask==0).
    inv_n = 1.0 / float(true_dim)
    xm = x * mask
    mean = jnp.sum(xm, axis=-1, keepdims=True) * inv_n
    diff = (x - mean) * mask
    var = jnp.sum(diff * diff, axis=-1, keepdims=True) * inv_n
    inv = lax.rsqrt(var + EPS)
    # padded lanes of g/b are zero -> output is exactly 0 on padded lanes.
    return (x - mean) * inv * g + b


def rtnmac_kernel(xin_ref, ew1_ref, ew2_ref, dw1_ref, dw2_ref, vec_ref, out_ref,
                  *, A, in_dim, cd_dim, hid_dim):
    f32 = jnp.float32
    bf16 = jnp.bfloat16

    # Lane masks for masked LayerNorms over padded feature dims.
    lane = lax.broadcasted_iota(jnp.int32, (1, LANE), 1)
    m_hid = (lane < hid_dim).astype(f32)
    m_cd = (lane < cd_dim).astype(f32)
    m_in = (lane < in_dim).astype(f32)

    # Row layout of the packed (26, 128) bias/gamma/beta slab (see pack_params).
    (E1B1, E1G1, E1BE1, E1B2, E1G2, E1BE2,
     E2B1, E2G1, E2BE1, E2B2, E2G2, E2BE2,
     NG, NB,
     D1B1, D1G1, D1BE1, D1B2, D1G2, D1BE2,
     D2B1, D2G1, D2BE1, D2B2, D2G2, D2BE2) = range(26)

    def vec(i):
        return vec_ref[i:i + 1, :]  # static (1, 128) slice, broadcasts over batch

    # Packed activation slab: [x1 | x2 | noise], each a 128-lane block.
    x1 = xin_ref[:, 0 * LANE:1 * LANE].astype(bf16)
    x2 = xin_ref[:, 1 * LANE:2 * LANE].astype(bf16)
    noise = xin_ref[:, 2 * LANE:3 * LANE]  # f32, only first cd_dim lanes are real

    # --- encoders: Linear -> BN -> Linear -> BN (bf16 MXU, f32 accumulate) ---
    h1 = _batchnorm(
        jnp.dot(x1, ew1_ref[:, 0:LANE], preferred_element_type=f32) + vec(E1B1),
        vec(E1G1), vec(E1BE1))
    z1 = _batchnorm(
        jnp.dot(h1.astype(bf16), ew2_ref[:, 0:LANE], preferred_element_type=f32) + vec(E1B2),
        vec(E1G2), vec(E1BE2))

    h2 = _batchnorm(
        jnp.dot(x2, ew1_ref[:, LANE:2 * LANE], preferred_element_type=f32) + vec(E2B1),
        vec(E2G1), vec(E2BE1))
    z2 = _batchnorm(
        jnp.dot(h2.astype(bf16), ew2_ref[:, LANE:2 * LANE], preferred_element_type=f32) + vec(E2B2),
        vec(E2G2), vec(E2BE2))

    # --- MAC AWGN channel (no fading): signal1 == signal2 ---
    signal = jax.nn.sigmoid(z1) * A + jax.nn.sigmoid(z2) * A + noise

    # --- shared decoder-input LayerNorm over compressed_dim ---
    nsig = _masked_layernorm(signal, vec(NG), vec(NB), m_cd, cd_dim)

    # --- decoders ---
    # Both decoders consume the same nsig -> single fused matmul over 2*128 lanes.
    dh = jnp.dot(nsig.astype(bf16), dw1_ref[...], preferred_element_type=f32)
    d1h = _masked_layernorm(dh[:, 0:LANE] + vec(D1B1), vec(D1G1), vec(D1BE1), m_hid, hid_dim)
    d2h = _masked_layernorm(dh[:, LANE:2 * LANE] + vec(D2B1), vec(D2G1), vec(D2BE1), m_hid, hid_dim)

    o1 = jnp.dot(d1h.astype(bf16), dw2_ref[:, 0:LANE], preferred_element_type=f32) + vec(D1B2)
    o2 = jnp.dot(d2h.astype(bf16), dw2_ref[:, LANE:2 * LANE], preferred_element_type=f32) + vec(D2B2)

    out_ref[:, 0:LANE] = _masked_layernorm(o1, vec(D1G2), vec(D1BE2), m_in, in_dim)
    out_ref[:, LANE:2 * LANE] = _masked_layernorm(o2, vec(D2G2), vec(D2BE2), m_in, in_dim)


# ----------------------------------------------------------------------------
# Parameter construction / packing (done once, outside the hot path)
# ----------------------------------------------------------------------------

def init_params(key, in_channels, compressed_dim, hidden=100):
    """Deterministic synthetic parameters (PyTorch-like uniform init for linears,
    ones/zeros for norm affine params). Weights stored as (in, out)."""
    def linear(k, fan_in, fan_out):
        k1, k2 = jax.random.split(k)
        bound = 1.0 / jnp.sqrt(float(fan_in))
        w = jax.random.uniform(k1, (fan_in, fan_out), jnp.float32, -bound, bound)
        b = jax.random.uniform(k2, (fan_out,), jnp.float32, -bound, bound)
        return w, b

    def norm(dim):
        return jnp.ones((dim,), jnp.float32), jnp.zeros((dim,), jnp.float32)

    keys = jax.random.split(key, 8)
    params = {}
    for i, name in enumerate(('e1', 'e2')):
        w1, b1 = linear(keys[2 * i], in_channels, hidden)
        g1, be1 = norm(hidden)
        w2, b2 = linear(keys[2 * i + 1], hidden, compressed_dim)
        g2, be2 = norm(compressed_dim)
        params[name] = dict(w1=w1, b1=b1, g1=g1, be1=be1, w2=w2, b2=b2, g2=g2, be2=be2)
    ng, nb = norm(compressed_dim)
    params['norm'] = dict(g=ng, b=nb)
    for i, name in enumerate(('d1', 'd2')):
        w1, b1 = linear(keys[4 + 2 * i], compressed_dim, hidden)
        g1, be1 = norm(hidden)
        w2, b2 = linear(keys[5 + 2 * i], hidden, in_channels)
        g2, be2 = norm(in_channels)
        params[name] = dict(w1=w1, b1=b1, g1=g1, be1=be1, w2=w2, b2=b2, g2=g2, be2=be2)
    return params


def _pad_w(w):
    r, c = w.shape
    assert r <= LANE and c <= LANE
    return jnp.pad(jnp.asarray(w, jnp.float32), ((0, LANE - r), (0, LANE - c)))


def _pad_vec(v):
    v = jnp.asarray(v, jnp.float32).reshape(1, -1)
    assert v.shape[1] <= LANE
    return jnp.pad(v, ((0, 0), (0, LANE - v.shape[1])))


def pack_params(p, in_channels, compressed_dim, hidden=100):
    """Pack 34 small arrays into 4 bf16 weight slabs + 1 f32 vector slab."""
    ew1 = jnp.concatenate([_pad_w(p['e1']['w1']), _pad_w(p['e2']['w1'])], axis=1).astype(jnp.bfloat16)
    ew2 = jnp.concatenate([_pad_w(p['e1']['w2']), _pad_w(p['e2']['w2'])], axis=1).astype(jnp.bfloat16)
    dw1 = jnp.concatenate([_pad_w(p['d1']['w1']), _pad_w(p['d2']['w1'])], axis=1).astype(jnp.bfloat16)
    dw2 = jnp.concatenate([_pad_w(p['d1']['w2']), _pad_w(p['d2']['w2'])], axis=1).astype(jnp.bfloat16)

    rows = [
        p['e1']['b1'], p['e1']['g1'], p['e1']['be1'],
        p['e1']['b2'], p['e1']['g2'], p['e1']['be2'],
        p['e2']['b1'], p['e2']['g1'], p['e2']['be1'],
        p['e2']['b2'], p['e2']['g2'], p['e2']['be2'],
        p['norm']['g'], p['norm']['b'],
        p['d1']['b1'], p['d1']['g1'], p['d1']['be1'],
        p['d1']['b2'], p['d1']['g2'], p['d1']['be2'],
        p['d2']['b1'], p['d2']['g1'], p['d2']['be1'],
        p['d2']['b2'], p['d2']['g2'], p['d2']['be2'],
    ]
    vecs = jnp.concatenate([_pad_vec(r) for r in rows], axis=0)  # (26, 128) f32
    return dict(ew1=ew1, ew2=ew2, dw1=dw1, dw2=dw2, vecs=vecs,
                in_dim=in_channels, cd_dim=compressed_dim, hid_dim=hidden)


# ----------------------------------------------------------------------------
# Forward wrapper
# ----------------------------------------------------------------------------

def rtnmac_forward(x1, x2, noise, packed, A=2.9):
    B, in_dim = x1.shape
    cd = noise.shape[1]
    assert in_dim == packed['in_dim'] and cd == packed['cd_dim']

    # Pack activations + noise into one lane-dense slab (layout plumbing only).
    xin = jnp.concatenate([
        jnp.pad(x1.astype(jnp.float32), ((0, 0), (0, LANE - in_dim))),
        jnp.pad(x2.astype(jnp.float32), ((0, 0), (0, LANE - in_dim))),
        jnp.pad(noise.astype(jnp.float32), ((0, 0), (0, LANE - cd))),
    ], axis=1)  # (B, 3*128)

    kernel = functools.partial(
        rtnmac_kernel, A=float(A),
        in_dim=in_dim, cd_dim=cd, hid_dim=packed['hid_dim'])

    n_mxu128 = 8  # equivalent (·,128)x(128,128) matmuls: 4 enc + 2 dec-l1(fused) + 2 dec-l2
    flops = 2 * B * LANE * LANE * n_mxu128
    transcendentals = 2 * B * LANE  # sigmoids (rsqrt in norms is negligible)
    bytes_accessed = (
        xin.size * 4
        + 2 * (packed['ew1'].size + packed['ew2'].size + packed['dw1'].size + packed['dw2'].size)
        + packed['vecs'].size * 4
        + B * 2 * LANE * 4)

    out = pl.pallas_call(
        kernel,
        out_shape=jax.ShapeDtypeStruct((B, 2 * LANE), jnp.float32),
        in_specs=[pl.BlockSpec(memory_space=pltpu.MemorySpace.VMEM)] * 6,
        out_specs=pl.BlockSpec(memory_space=pltpu.MemorySpace.VMEM),
        cost_estimate=pl.CostEstimate(
            flops=int(flops),
            transcendentals=int(transcendentals),
            bytes_accessed=int(bytes_accessed)),
    )(xin, packed['ew1'], packed['ew2'], packed['dw1'], packed['dw2'], packed['vecs'])

    return out[:, :in_dim], out[:, LANE:LANE + in_dim]


if __name__ == "__main__":
    B = 8
    IN_CHANNELS = 32
    COMPRESSED_DIM = 16
    HIDDEN = 100

    key = jax.random.PRNGKey(0)
    k_x1, k_x2, k_noise, k_params = jax.random.split(key, 4)

    x1 = jax.random.normal(k_x1, (B, IN_CHANNELS), jnp.float32)
    x2 = jax.random.normal(k_x2, (B, IN_CHANNELS), jnp.float32)
    noise = jax.random.normal(k_noise, (B, COMPRESSED_DIM), jnp.float32)

    params = init_params(k_params, IN_CHANNELS, COMPRESSED_DIM, hidden=HIDDEN)
    packed = pack_params(params, IN_CHANNELS, COMPRESSED_DIM, hidden=HIDDEN)

    out1, out2 = rtnmac_forward(x1, x2, noise, packed, A=2.9)
    jax.block_until_ready((out1, out2))

    assert out1.shape == (B, IN_CHANNELS) and out2.shape == (B, IN_CHANNELS)
    assert bool(jnp.all(jnp.isfinite(out1))) and bool(jnp.all(jnp.isfinite(out2)))
    print("KERNEL_OK")
</pallas_src>

<mosaic_0001>
module attributes {stable_mosaic.version = 11 : i64} {
  func.func @rtnmac_kernel(%arg0: memref<8x384xf32, #tpu.memory_space<vmem>>, %arg1: memref<128x256xbf16, #tpu.memory_space<vmem>>, %arg2: memref<128x256xbf16, #tpu.memory_space<vmem>>, %arg3: memref<128x256xbf16, #tpu.memory_space<vmem>>, %arg4: memref<128x256xbf16, #tpu.memory_space<vmem>>, %arg5: memref<26x128xf32, #tpu.memory_space<vmem>>, %arg6: memref<8x256xf32, #tpu.memory_space<vmem>>) attributes {dimension_semantics = [], scalar_prefetch = 0 : i64, scratch_operands = 0 : i64, tpu.core_type = #tpu.core_type<tc>} {
    %0 = tpu.iota {dimensions = array<i32: 1>} : vector<1x128xi32>
    %c100_i32 = arith.constant 100 : i32
    %1 = vector.broadcast %c100_i32 : i32 to vector<1x128xi32>
    %2 = arith.cmpi slt, %0, %1 : vector<1x128xi32>
    %3 = arith.extui %2 : vector<1x128xi1> to vector<1x128xi32>
    %4 = arith.sitofp %3 : vector<1x128xi32> to vector<1x128xf32>
    %c16_i32 = arith.constant 16 : i32
    %5 = vector.broadcast %c16_i32 : i32 to vector<1x128xi32>
    %6 = arith.cmpi slt, %0, %5 : vector<1x128xi32>
    %7 = arith.extui %6 : vector<1x128xi1> to vector<1x128xi32>
    %8 = arith.sitofp %7 : vector<1x128xi32> to vector<1x128xf32>
    %c32_i32 = arith.constant 32 : i32
    %9 = vector.broadcast %c32_i32 : i32 to vector<1x128xi32>
    %10 = arith.cmpi slt, %0, %9 : vector<1x128xi32>
    %11 = arith.extui %10 : vector<1x128xi1> to vector<1x128xi32>
    %12 = arith.sitofp %11 : vector<1x128xi32> to vector<1x128xf32>
    %c0 = arith.constant 0 : index
    %c0_0 = arith.constant 0 : index
    %13 = vector.load %arg0[%c0, %c0_0] : memref<8x384xf32, #tpu.memory_space<vmem>>, vector<8x128xf32>
    %14 = arith.truncf %13 : vector<8x128xf32> to vector<8x128xbf16>
    %c0_1 = arith.constant 0 : index
    %c128 = arith.constant 128 : index
    %15 = vector.load %arg0[%c0_1, %c128] : memref<8x384xf32, #tpu.memory_space<vmem>>, vector<8x128xf32>
    %16 = arith.truncf %15 : vector<8x128xf32> to vector<8x128xbf16>
    %c0_2 = arith.constant 0 : index
    %c256 = arith.constant 256 : index
    %17 = vector.load %arg0[%c0_2, %c256] : memref<8x384xf32, #tpu.memory_space<vmem>>, vector<8x128xf32>
    %c0_3 = arith.constant 0 : index
    %c0_4 = arith.constant 0 : index
    %18 = vector.load %arg1[%c0_3, %c0_4] : memref<128x256xbf16, #tpu.memory_space<vmem>>, vector<128x128xbf16>
    %cst = arith.constant dense<0.000000e+00> : vector<8x128xf32>
    %19 = tpu.matmul %14, %18, %cst {dimension_numbers = #tpu.dot_dimension_numbers<[1], [0], [0], [1], [0, 0, 1, 1], [], []>} : vector<8x128xbf16>, vector<128x128xbf16>, vector<8x128xf32> -> vector<8x128xf32>
    %c0_5 = arith.constant 0 : index
    %c0_6 = arith.constant 0 : index
    %20 = vector.load %arg5[%c0_5, %c0_6] : memref<26x128xf32, #tpu.memory_space<vmem>>, vector<1x128xf32>
    %21 = vector.broadcast %20 : vector<1x128xf32> to vector<8x128xf32>
    %22 = arith.addf %19, %21 : vector<8x128xf32>
    %c1 = arith.constant 1 : index
    %c0_7 = arith.constant 0 : index
    %23 = vector.load %arg5[%c1, %c0_7] : memref<26x128xf32, #tpu.memory_space<vmem>>, vector<1x128xf32>
    %c2 = arith.constant 2 : index
    %c0_8 = arith.constant 0 : index
    %24 = vector.load %arg5[%c2, %c0_8] : memref<26x128xf32, #tpu.memory_space<vmem>>, vector<1x128xf32>
    %cst_9 = arith.constant dense<0.000000e+00> : vector<128xf32>
    %25 = vector.multi_reduction <add>, %22, %cst_9 [0] : vector<8x128xf32> to vector<128xf32>
    %26 = vector.shape_cast %25 : vector<128xf32> to vector<1x128xf32>
    %cst_10 = arith.constant 8.000000e+00 : f32
    %27 = vector.broadcast %cst_10 : f32 to vector<1x128xf32>
    %28 = arith.divf %26, %27 : vector<1x128xf32>
    %29 = vector.broadcast %28 : vector<1x128xf32> to vector<8x128xf32>
    %30 = arith.subf %22, %29 : vector<8x128xf32>
    %31 = arith.mulf %30, %30 : vector<8x128xf32>
    %cst_11 = arith.constant dense<0.000000e+00> : vector<128xf32>
    %32 = vector.multi_reduction <add>, %31, %cst_11 [0] : vector<8x128xf32> to vector<128xf32>
    %33 = vector.shape_cast %32 : vector<128xf32> to vector<1x128xf32>
    %cst_12 = arith.constant 8.000000e+00 : f32
    %34 = vector.broadcast %cst_12 : f32 to vector<1x128xf32>
    %35 = arith.divf %33, %34 : vector<1x128xf32>
    %cst_13 = arith.constant 9.99999974E-6 : f32
    %36 = vector.broadcast %cst_13 : f32 to vector<1x128xf32>
    %37 = arith.addf %35, %36 : vector<1x128xf32>
    %38 = math.rsqrt %37 : vector<1x128xf32>
    %39 = vector.broadcast %28 : vector<1x128xf32> to vector<8x128xf32>
    %40 = arith.subf %22, %39 : vector<8x128xf32>
    %41 = vector.broadcast %38 : vector<1x128xf32> to vector<8x128xf32>
    %42 = arith.mulf %40, %41 : vector<8x128xf32>
    %43 = vector.broadcast %23 : vector<1x128xf32> to vector<8x128xf32>
    %44 = arith.mulf %42, %43 : vector<8x128xf32>
    %45 = vector.broadcast %24 : vector<1x128xf32> to vector<8x128xf32>
    %46 = arith.addf %44, %45 : vector<8x128xf32>
    %47 = arith.truncf %46 : vector<8x128xf32> to vector<8x128xbf16>
    %c0_14 = arith.constant 0 : index
    %c0_15 = arith.constant 0 : index
    %48 = vector.load %arg2[%c0_14, %c0_15] : memref<128x256xbf16, #tpu.memory_space<vmem>>, vector<128x128xbf16>
    %cst_16 = arith.constant dense<0.000000e+00> : vector<8x128xf32>
    %49 = tpu.matmul %47, %48, %cst_16 {dimension_numbers = #tpu.dot_dimension_numbers<[1], [0], [0], [1], [0, 0, 1, 1], [], []>} : vector<8x128xbf16>, vector<128x128xbf16>, vector<8x128xf32> -> vector<8x128xf32>
    %c3 = arith.constant 3 : index
    %c0_17 = arith.constant 0 : index
    %50 = vector.load %arg5[%c3, %c0_17] : memref<26x128xf32, #tpu.memory_space<vmem>>, vector<1x128xf32>
    %51 = vector.broadcast %50 : vector<1x128xf32> to vector<8x128xf32>
    %52 = arith.addf %49, %51 : vector<8x128xf32>
    %c4 = arith.constant 4 : index
    %c0_18 = arith.constant 0 : index
    %53 = vector.load %arg5[%c4, %c0_18] : memref<26x128xf32, #tpu.memory_space<vmem>>, vector<1x128xf32>
    %c5 = arith.constant 5 : index
    %c0_19 = arith.constant 0 : index
    %54 = vector.load %arg5[%c5, %c0_19] : memref<26x128xf32, #tpu.memory_space<vmem>>, vector<1x128xf32>
    %cst_20 = arith.constant dense<0.000000e+00> : vector<128xf32>
    %55 = vector.multi_reduction <add>, %52, %cst_20 [0] : vector<8x128xf32> to vector<128xf32>
    %56 = vector.shape_cast %55 : vector<128xf32> to vector<1x128xf32>
    %cst_21 = arith.constant 8.000000e+00 : f32
    %57 = vector.broadcast %cst_21 : f32 to vector<1x128xf32>
    %58 = arith.divf %56, %57 : vector<1x128xf32>
    %59 = vector.broadcast %58 : vector<1x128xf32> to vector<8x128xf32>
    %60 = arith.subf %52, %59 : vector<8x128xf32>
    %61 = arith.mulf %60, %60 : vector<8x128xf32>
    %cst_22 = arith.constant dense<0.000000e+00> : vector<128xf32>
    %62 = vector.multi_reduction <add>, %61, %cst_22 [0] : vector<8x128xf32> to vector<128xf32>
    %63 = vector.shape_cast %62 : vector<128xf32> to vector<1x128xf32>
    %cst_23 = arith.constant 8.000000e+00 : f32
    %64 = vector.broadcast %cst_23 : f32 to vector<1x128xf32>
    %65 = arith.divf %63, %64 : vector<1x128xf32>
    %cst_24 = arith.constant 9.99999974E-6 : f32
    %66 = vector.broadcast %cst_24 : f32 to vector<1x128xf32>
    %67 = arith.addf %65, %66 : vector<1x128xf32>
    %68 = math.rsqrt %67 : vector<1x128xf32>
    %69 = vector.broadcast %58 : vector<1x128xf32> to vector<8x128xf32>
    %70 = arith.subf %52, %69 : vector<8x128xf32>
    %71 = vector.broadcast %68 : vector<1x128xf32> to vector<8x128xf32>
    %72 = arith.mulf %70, %71 : vector<8x128xf32>
    %73 = vector.broadcast %53 : vector<1x128xf32> to vector<8x128xf32>
    %74 = arith.mulf %72, %73 : vector<8x128xf32>
    %75 = vector.broadcast %54 : vector<1x128xf32> to vector<8x128xf32>
    %76 = arith.addf %74, %75 : vector<8x128xf32>
    %c0_25 = arith.constant 0 : index
    %c128_26 = arith.constant 128 : index
    %77 = vector.load %arg1[%c0_25, %c128_26] : memref<128x256xbf16, #tpu.memory_space<vmem>>, vector<128x128xbf16>
    %cst_27 = arith.constant dense<0.000000e+00> : vector<8x128xf32>
    %78 = tpu.matmul %16, %77, %cst_27 {dimension_numbers = #tpu.dot_dimension_numbers<[1], [0], [0], [1], [0, 0, 1, 1], [], []>} : vector<8x128xbf16>, vector<128x128xbf16>, vector<8x128xf32> -> vector<8x128xf32>
    %c6 = arith.constant 6 : index
    %c0_28 = arith.constant 0 : index
    %79 = vector.load %arg5[%c6, %c0_28] : memref<26x128xf32, #tpu.memory_space<vmem>>, vector<1x128xf32>
    %80 = vector.broadcast %79 : vector<1x128xf32> to vector<8x128xf32>
    %81 = arith.addf %78, %80 : vector<8x128xf32>
    %c7 = arith.constant 7 : index
    %c0_29 = arith.constant 0 : index
    %82 = vector.load %arg5[%c7, %c0_29] : memref<26x128xf32, #tpu.memory_space<vmem>>, vector<1x128xf32>
    %c8 = arith.constant 8 : index
    %c0_30 = arith.constant 0 : index
    %83 = vector.load %arg5[%c8, %c0_30] : memref<26x128xf32, #tpu.memory_space<vmem>>, vector<1x128xf32>
    %cst_31 = arith.constant dense<0.000000e+00> : vector<128xf32>
    %84 = vector.multi_reduction <add>, %81, %cst_31 [0] : vector<8x128xf32> to vector<128xf32>
    %85 = vector.shape_cast %84 : vector<128xf32> to vector<1x128xf32>
    %cst_32 = arith.constant 8.000000e+00 : f32
    %86 = vector.broadcast %cst_32 : f32 to vector<1x128xf32>
    %87 = arith.divf %85, %86 : vector<1x128xf32>
    %88 = vector.broadcast %87 : vector<1x128xf32> to vector<8x128xf32>
    %89 = arith.subf %81, %88 : vector<8x128xf32>
    %90 = arith.mulf %89, %89 : vector<8x128xf32>
    %cst_33 = arith.constant dense<0.000000e+00> : vector<128xf32>
    %91 = vector.multi_reduction <add>, %90, %cst_33 [0] : vector<8x128xf32> to vector<128xf32>
    %92 = vector.shape_cast %91 : vector<128xf32> to vector<1x128xf32>
    %cst_34 = arith.constant 8.000000e+00 : f32
    %93 = vector.broadcast %cst_34 : f32 to vector<1x128xf32>
    %94 = arith.divf %92, %93 : vector<1x128xf32>
    %cst_35 = arith.constant 9.99999974E-6 : f32
    %95 = vector.broadcast %cst_35 : f32 to vector<1x128xf32>
    %96 = arith.addf %94, %95 : vector<1x128xf32>
    %97 = math.rsqrt %96 : vector<1x128xf32>
    %98 = vector.broadcast %87 : vector<1x128xf32> to vector<8x128xf32>
    %99 = arith.subf %81, %98 : vector<8x128xf32>
    %100 = vector.broadcast %97 : vector<1x128xf32> to vector<8x128xf32>
    %101 = arith.mulf %99, %100 : vector<8x128xf32>
    %102 = vector.broadcast %82 : vector<1x128xf32> to vector<8x128xf32>
    %103 = arith.mulf %101, %102 : vector<8x128xf32>
    %104 = vector.broadcast %83 : vector<1x128xf32> to vector<8x128xf32>
    %105 = arith.addf %103, %104 : vector<8x128xf32>
    %106 = arith.truncf %105 : vector<8x128xf32> to vector<8x128xbf16>
    %c0_36 = arith.constant 0 : index
    %c128_37 = arith.constant 128 : index
    %107 = vector.load %arg2[%c0_36, %c128_37] : memref<128x256xbf16, #tpu.memory_space<vmem>>, vector<128x128xbf16>
    %cst_38 = arith.constant dense<0.000000e+00> : vector<8x128xf32>
    %108 = tpu.matmul %106, %107, %cst_38 {dimension_numbers = #tpu.dot_dimension_numbers<[1], [0], [0], [1], [0, 0, 1, 1], [], []>} : vector<8x128xbf16>, vector<128x128xbf16>, vector<8x128xf32> -> vector<8x128xf32>
    %c9 = arith.constant 9 : index
    %c0_39 = arith.constant 0 : index
    %109 = vector.load %arg5[%c9, %c0_39] : memref<26x128xf32, #tpu.memory_space<vmem>>, vector<1x128xf32>
    %110 = vector.broadcast %109 : vector<1x128xf32> to vector<8x128xf32>
    %111 = arith.addf %108, %110 : vector<8x128xf32>
    %c10 = arith.constant 10 : index
    %c0_40 = arith.constant 0 : index
    %112 = vector.load %arg5[%c10, %c0_40] : memref<26x128xf32, #tpu.memory_space<vmem>>, vector<1x128xf32>
    %c11 = arith.constant 11 : index
    %c0_41 = arith.constant 0 : index
    %113 = vector.load %arg5[%c11, %c0_41] : memref<26x128xf32, #tpu.memory_space<vmem>>, vector<1x128xf32>
    %cst_42 = arith.constant dense<0.000000e+00> : vector<128xf32>
    %114 = vector.multi_reduction <add>, %111, %cst_42 [0] : vector<8x128xf32> to vector<128xf32>
    %115 = vector.shape_cast %114 : vector<128xf32> to vector<1x128xf32>
    %cst_43 = arith.constant 8.000000e+00 : f32
    %116 = vector.broadcast %cst_43 : f32 to vector<1x128xf32>
    %117 = arith.divf %115, %116 : vector<1x128xf32>
    %118 = vector.broadcast %117 : vector<1x128xf32> to vector<8x128xf32>
    %119 = arith.subf %111, %118 : vector<8x128xf32>
    %120 = arith.mulf %119, %119 : vector<8x128xf32>
    %cst_44 = arith.constant dense<0.000000e+00> : vector<128xf32>
    %121 = vector.multi_reduction <add>, %120, %cst_44 [0] : vector<8x128xf32> to vector<128xf32>
    %122 = vector.shape_cast %121 : vector<128xf32> to vector<1x128xf32>
    %cst_45 = arith.constant 8.000000e+00 : f32
    %123 = vector.broadcast %cst_45 : f32 to vector<1x128xf32>
    %124 = arith.divf %122, %123 : vector<1x128xf32>
    %cst_46 = arith.constant 9.99999974E-6 : f32
    %125 = vector.broadcast %cst_46 : f32 to vector<1x128xf32>
    %126 = arith.addf %124, %125 : vector<1x128xf32>
    %127 = math.rsqrt %126 : vector<1x128xf32>
    %128 = vector.broadcast %117 : vector<1x128xf32> to vector<8x128xf32>
    %129 = arith.subf %111, %128 : vector<8x128xf32>
    %130 = vector.broadcast %127 : vector<1x128xf32> to vector<8x128xf32>
    %131 = arith.mulf %129, %130 : vector<8x128xf32>
    %132 = vector.broadcast %112 : vector<1x128xf32> to vector<8x128xf32>
    %133 = arith.mulf %131, %132 : vector<8x128xf32>
    %134 = vector.broadcast %113 : vector<1x128xf32> to vector<8x128xf32>
    %135 = arith.addf %133, %134 : vector<8x128xf32>
    %136 = arith.negf %76 : vector<8x128xf32>
    %137 = math.exp %136 : vector<8x128xf32>
    %cst_47 = arith.constant 1.000000e+00 : f32
    %138 = vector.broadcast %cst_47 : f32 to vector<8x128xf32>
    %139 = arith.addf %138, %137 : vector<8x128xf32>
    %140 = arith.divf %138, %139 : vector<8x128xf32>
    %cst_48 = arith.constant 2.900000e+00 : f32
    %141 = vector.broadcast %cst_48 : f32 to vector<8x128xf32>
    %142 = arith.mulf %140, %141 : vector<8x128xf32>
    %143 = arith.negf %135 : vector<8x128xf32>
    %144 = math.exp %143 : vector<8x128xf32>
    %cst_49 = arith.constant 1.000000e+00 : f32
    %145 = vector.broadcast %cst_49 : f32 to vector<8x128xf32>
    %146 = arith.addf %145, %144 : vector<8x128xf32>
    %147 = arith.divf %145, %146 : vector<8x128xf32>
    %cst_50 = arith.constant 2.900000e+00 : f32
    %148 = vector.broadcast %cst_50 : f32 to vector<8x128xf32>
    %149 = arith.mulf %147, %148 : vector<8x128xf32>
    %150 = arith.addf %142, %149 : vector<8x128xf32>
    %151 = arith.addf %150, %17 : vector<8x128xf32>
    %c12 = arith.constant 12 : index
    %c0_51 = arith.constant 0 : index
    %152 = vector.load %arg5[%c12, %c0_51] : memref<26x128xf32, #tpu.memory_space<vmem>>, vector<1x128xf32>
    %c13 = arith.constant 13 : index
    %c0_52 = arith.constant 0 : index
    %153 = vector.load %arg5[%c13, %c0_52] : memref<26x128xf32, #tpu.memory_space<vmem>>, vector<1x128xf32>
    %154 = vector.broadcast %8 : vector<1x128xf32> to vector<8x128xf32>
    %155 = arith.mulf %151, %154 : vector<8x128xf32>
    %cst_53 = arith.constant dense<0.000000e+00> : vector<8xf32>
    %156 = vector.multi_reduction <add>, %155, %cst_53 [1] : vector<8x128xf32> to vector<8xf32>
    %157 = vector.shape_cast %156 : vector<8xf32> to vector<8x1xf32>
    %cst_54 = arith.constant 6.250000e-02 : f32
    %158 = vector.broadcast %cst_54 : f32 to vector<8x1xf32>
    %159 = arith.mulf %157, %158 : vector<8x1xf32>
    %160 = vector.broadcast %159 : vector<8x1xf32> to vector<8x128xf32>
    %161 = arith.subf %151, %160 : vector<8x128xf32>
    %162 = vector.broadcast %8 : vector<1x128xf32> to vector<8x128xf32>
    %163 = arith.mulf %161, %162 : vector<8x128xf32>
    %164 = arith.mulf %163, %163 : vector<8x128xf32>
    %cst_55 = arith.constant dense<0.000000e+00> : vector<8xf32>
    %165 = vector.multi_reduction <add>, %164, %cst_55 [1] : vector<8x128xf32> to vector<8xf32>
    %166 = vector.shape_cast %165 : vector<8xf32> to vector<8x1xf32>
    %cst_56 = arith.constant 6.250000e-02 : f32
    %167 = vector.broadcast %cst_56 : f32 to vector<8x1xf32>
    %168 = arith.mulf %166, %167 : vector<8x1xf32>
    %cst_57 = arith.constant 9.99999974E-6 : f32
    %169 = vector.broadcast %cst_57 : f32 to vector<8x1xf32>
    %170 = arith.addf %168, %169 : vector<8x1xf32>
    %171 = math.rsqrt %170 : vector<8x1xf32>
    %172 = vector.broadcast %159 : vector<8x1xf32> to vector<8x128xf32>
    %173 = arith.subf %151, %172 : vector<8x128xf32>
    %174 = vector.broadcast %171 : vector<8x1xf32> to vector<8x128xf32>
    %175 = arith.mulf %173, %174 : vector<8x128xf32>
    %176 = vector.broadcast %152 : vector<1x128xf32> to vector<8x128xf32>
    %177 = arith.mulf %175, %176 : vector<8x128xf32>
    %178 = vector.broadcast %153 : vector<1x128xf32> to vector<8x128xf32>
    %179 = arith.addf %177, %178 : vector<8x128xf32>
    %180 = arith.truncf %179 : vector<8x128xf32> to vector<8x128xbf16>
    %c0_58 = arith.constant 0 : index
    %c0_59 = arith.constant 0 : index
    %181 = vector.load %arg3[%c0_58, %c0_59] : memref<128x256xbf16, #tpu.memory_space<vmem>>, vector<128x256xbf16>
    %cst_60 = arith.constant dense<0.000000e+00> : vector<8x256xf32>
    %182 = tpu.matmul %180, %181, %cst_60 {dimension_numbers = #tpu.dot_dimension_numbers<[1], [0], [0], [1], [0, 0, 1, 1], [], []>} : vector<8x128xbf16>, vector<128x256xbf16>, vector<8x256xf32> -> vector<8x256xf32>
    %183 = vector.extract_strided_slice %182 {offsets = [0, 0], sizes = [8, 128], strides = [1, 1]} : vector<8x256xf32> to vector<8x128xf32>
    %c14 = arith.constant 14 : index
    %c0_61 = arith.constant 0 : index
    %184 = vector.load %arg5[%c14, %c0_61] : memref<26x128xf32, #tpu.memory_space<vmem>>, vector<1x128xf32>
    %185 = vector.broadcast %184 : vector<1x128xf32> to vector<8x128xf32>
    %186 = arith.addf %183, %185 : vector<8x128xf32>
    %c15 = arith.constant 15 : index
    %c0_62 = arith.constant 0 : index
    %187 = vector.load %arg5[%c15, %c0_62] : memref<26x128xf32, #tpu.memory_space<vmem>>, vector<1x128xf32>
    %c16 = arith.constant 16 : index
    %c0_63 = arith.constant 0 : index
    %188 = vector.load %arg5[%c16, %c0_63] : memref<26x128xf32, #tpu.memory_space<vmem>>, vector<1x128xf32>
    %189 = vector.broadcast %4 : vector<1x128xf32> to vector<8x128xf32>
    %190 = arith.mulf %186, %189 : vector<8x128xf32>
    %cst_64 = arith.constant dense<0.000000e+00> : vector<8xf32>
    %191 = vector.multi_reduction <add>, %190, %cst_64 [1] : vector<8x128xf32> to vector<8xf32>
    %192 = vector.shape_cast %191 : vector<8xf32> to vector<8x1xf32>
    %cst_65 = arith.constant 0.00999999977 : f32
    %193 = vector.broadcast %cst_65 : f32 to vector<8x1xf32>
    %194 = arith.mulf %192, %193 : vector<8x1xf32>
    %195 = vector.broadcast %194 : vector<8x1xf32> to vector<8x128xf32>
    %196 = arith.subf %186, %195 : vector<8x128xf32>
    %197 = vector.broadcast %4 : vector<1x128xf32> to vector<8x128xf32>
    %198 = arith.mulf %196, %197 : vector<8x128xf32>
    %199 = arith.mulf %198, %198 : vector<8x128xf32>
    %cst_66 = arith.constant dense<0.000000e+00> : vector<8xf32>
    %200 = vector.multi_reduction <add>, %199, %cst_66 [1] : vector<8x128xf32> to vector<8xf32>
    %201 = vector.shape_cast %200 : vector<8xf32> to vector<8x1xf32>
    %cst_67 = arith.constant 0.00999999977 : f32
    %202 = vector.broadcast %cst_67 : f32 to vector<8x1xf32>
    %203 = arith.mulf %201, %202 : vector<8x1xf32>
    %cst_68 = arith.constant 9.99999974E-6 : f32
    %204 = vector.broadcast %cst_68 : f32 to vector<8x1xf32>
    %205 = arith.addf %203, %204 : vector<8x1xf32>
    %206 = math.rsqrt %205 : vector<8x1xf32>
    %207 = vector.broadcast %194 : vector<8x1xf32> to vector<8x128xf32>
    %208 = arith.subf %186, %207 : vector<8x128xf32>
    %209 = vector.broadcast %206 : vector<8x1xf32> to vector<8x128xf32>
    %210 = arith.mulf %208, %209 : vector<8x128xf32>
    %211 = vector.broadcast %187 : vector<1x128xf32> to vector<8x128xf32>
    %212 = arith.mulf %210, %211 : vector<8x128xf32>
    %213 = vector.broadcast %188 : vector<1x128xf32> to vector<8x128xf32>
    %214 = arith.addf %212, %213 : vector<8x128xf32>
    %215 = vector.extract_strided_slice %182 {offsets = [0, 128], sizes = [8, 128], strides = [1, 1]} : vector<8x256xf32> to vector<8x128xf32>
    %c20 = arith.constant 20 : index
    %c0_69 = arith.constant 0 : index
    %216 = vector.load %arg5[%c20, %c0_69] : memref<26x128xf32, #tpu.memory_space<vmem>>, vector<1x128xf32>
    %217 = vector.broadcast %216 : vector<1x128xf32> to vector<8x128xf32>
    %218 = arith.addf %215, %217 : vector<8x128xf32>
    %c21 = arith.constant 21 : index
    %c0_70 = arith.constant 0 : index
    %219 = vector.load %arg5[%c21, %c0_70] : memref<26x128xf32, #tpu.memory_space<vmem>>, vector<1x128xf32>
    %c22 = arith.constant 22 : index
    %c0_71 = arith.constant 0 : index
    %220 = vector.load %arg5[%c22, %c0_71] : memref<26x128xf32, #tpu.memory_space<vmem>>, vector<1x128xf32>
    %221 = vector.broadcast %4 : vector<1x128xf32> to vector<8x128xf32>
    %222 = arith.mulf %218, %221 : vector<8x128xf32>
    %cst_72 = arith.constant dense<0.000000e+00> : vector<8xf32>
    %223 = vector.multi_reduction <add>, %222, %cst_72 [1] : vector<8x128xf32> to vector<8xf32>
    %224 = vector.shape_cast %223 : vector<8xf32> to vector<8x1xf32>
    %cst_73 = arith.constant 0.00999999977 : f32
    %225 = vector.broadcast %cst_73 : f32 to vector<8x1xf32>
    %226 = arith.mulf %224, %225 : vector<8x1xf32>
    %227 = vector.broadcast %226 : vector<8x1xf32> to vector<8x128xf32>
    %228 = arith.subf %218, %227 : vector<8x128xf32>
    %229 = vector.broadcast %4 : vector<1x128xf32> to vector<8x128xf32>
    %230 = arith.mulf %228, %229 : vector<8x128xf32>
    %231 = arith.mulf %230, %230 : vector<8x128xf32>
    %cst_74 = arith.constant dense<0.000000e+00> : vector<8xf32>
    %232 = vector.multi_reduction <add>, %231, %cst_74 [1] : vector<8x128xf32> to vector<8xf32>
    %233 = vector.shape_cast %232 : vector<8xf32> to vector<8x1xf32>
    %cst_75 = arith.constant 0.00999999977 : f32
    %234 = vector.broadcast %cst_75 : f32 to vector<8x1xf32>
    %235 = arith.mulf %233, %234 : vector<8x1xf32>
    %cst_76 = arith.constant 9.99999974E-6 : f32
    %236 = vector.broadcast %cst_76 : f32 to vector<8x1xf32>
    %237 = arith.addf %235, %236 : vector<8x1xf32>
    %238 = math.rsqrt %237 : vector<8x1xf32>
    %239 = vector.broadcast %226 : vector<8x1xf32> to vector<8x128xf32>
    %240 = arith.subf %218, %239 : vector<8x128xf32>
    %241 = vector.broadcast %238 : vector<8x1xf32> to vector<8x128xf32>
    %242 = arith.mulf %240, %241 : vector<8x128xf32>
    %243 = vector.broadcast %219 : vector<1x128xf32> to vector<8x128xf32>
    %244 = arith.mulf %242, %243 : vector<8x128xf32>
    %245 = vector.broadcast %220 : vector<1x128xf32> to vector<8x128xf32>
    %246 = arith.addf %244, %245 : vector<8x128xf32>
    %247 = arith.truncf %214 : vector<8x128xf32> to vector<8x128xbf16>
    %c0_77 = arith.constant 0 : index
    %c0_78 = arith.constant 0 : index
    %248 = vector.load %arg4[%c0_77, %c0_78] : memref<128x256xbf16, #tpu.memory_space<vmem>>, vector<128x128xbf16>
    %cst_79 = arith.constant dense<0.000000e+00> : vector<8x128xf32>
    %249 = tpu.matmul %247, %248, %cst_79 {dimension_numbers = #tpu.dot_dimension_numbers<[1], [0], [0], [1], [0, 0, 1, 1], [], []>} : vector<8x128xbf16>, vector<128x128xbf16>, vector<8x128xf32> -> vector<8x128xf32>
    %c17 = arith.constant 17 : index
    %c0_80 = arith.constant 0 : index
    %250 = vector.load %arg5[%c17, %c0_80] : memref<26x128xf32, #tpu.memory_space<vmem>>, vector<1x128xf32>
    %251 = vector.broadcast %250 : vector<1x128xf32> to vector<8x128xf32>
    %252 = arith.addf %249, %251 : vector<8x128xf32>
    %253 = arith.truncf %246 : vector<8x128xf32> to vector<8x128xbf16>
    %c0_81 = arith.constant 0 : index
    %c128_82 = arith.constant 128 : index
    %254 = vector.load %arg4[%c0_81, %c128_82] : memref<128x256xbf16, #tpu.memory_space<vmem>>, vector<128x128xbf16>
    %cst_83 = arith.constant dense<0.000000e+00> : vector<8x128xf32>
    %255 = tpu.matmul %253, %254, %cst_83 {dimension_numbers = #tpu.dot_dimension_numbers<[1], [0], [0], [1], [0, 0, 1, 1], [], []>} : vector<8x128xbf16>, vector<128x128xbf16>, vector<8x128xf32> -> vector<8x128xf32>
    %c23 = arith.constant 23 : index
    %c0_84 = arith.constant 0 : index
    %256 = vector.load %arg5[%c23, %c0_84] : memref<26x128xf32, #tpu.memory_space<vmem>>, vector<1x128xf32>
    %257 = vector.broadcast %256 : vector<1x128xf32> to vector<8x128xf32>
    %258 = arith.addf %255, %257 : vector<8x128xf32>
    %c18 = arith.constant 18 : index
    %c0_85 = arith.constant 0 : index
    %259 = vector.load %arg5[%c18, %c0_85] : memref<26x128xf32, #tpu.memory_space<vmem>>, vector<1x128xf32>
    %c19 = arith.constant 19 : index
    %c0_86 = arith.constant 0 : index
    %260 = vector.load %arg5[%c19, %c0_86] : memref<26x128xf32, #tpu.memory_space<vmem>>, vector<1x128xf32>
    %261 = vector.broadcast %12 : vector<1x128xf32> to vector<8x128xf32>
    %262 = arith.mulf %252, %261 : vector<8x128xf32>
    %cst_87 = arith.constant dense<0.000000e+00> : vector<8xf32>
    %263 = vector.multi_reduction <add>, %262, %cst_87 [1] : vector<8x128xf32> to vector<8xf32>
    %264 = vector.shape_cast %263 : vector<8xf32> to vector<8x1xf32>
    %cst_88 = arith.constant 3.125000e-02 : f32
    %265 = vector.broadcast %cst_88 : f32 to vector<8x1xf32>
    %266 = arith.mulf %264, %265 : vector<8x1xf32>
    %267 = vector.broadcast %266 : vector<8x1xf32> to vector<8x128xf32>
    %268 = arith.subf %252, %267 : vector<8x128xf32>
    %269 = vector.broadcast %12 : vector<1x128xf32> to vector<8x128xf32>
    %270 = arith.mulf %268, %269 : vector<8x128xf32>
    %271 = arith.mulf %270, %270 : vector<8x128xf32>
    %cst_89 = arith.constant dense<0.000000e+00> : vector<8xf32>
    %272 = vector.multi_reduction <add>, %271, %cst_89 [1] : vector<8x128xf32> to vector<8xf32>
    %273 = vector.shape_cast %272 : vector<8xf32> to vector<8x1xf32>
    %cst_90 = arith.constant 3.125000e-02 : f32
    %274 = vector.broadcast %cst_90 : f32 to vector<8x1xf32>
    %275 = arith.mulf %273, %274 : vector<8x1xf32>
    %cst_91 = arith.constant 9.99999974E-6 : f32
    %276 = vector.broadcast %cst_91 : f32 to vector<8x1xf32>
    %277 = arith.addf %275, %276 : vector<8x1xf32>
    %278 = math.rsqrt %277 : vector<8x1xf32>
    %279 = vector.broadcast %266 : vector<8x1xf32> to vector<8x128xf32>
    %280 = arith.subf %252, %279 : vector<8x128xf32>
    %281 = vector.broadcast %278 : vector<8x1xf32> to vector<8x128xf32>
    %282 = arith.mulf %280, %281 : vector<8x128xf32>
    %283 = vector.broadcast %259 : vector<1x128xf32> to vector<8x128xf32>
    %284 = arith.mulf %282, %283 : vector<8x128xf32>
    %285 = vector.broadcast %260 : vector<1x128xf32> to vector<8x128xf32>
    %286 = arith.addf %284, %285 : vector<8x128xf32>
    %c0_92 = arith.constant 0 : index
    %c0_93 = arith.constant 0 : index
    %287 = vector.load %arg6[%c0_92, %c0_93] : memref<8x256xf32, #tpu.memory_space<vmem>>, vector<8x128xf32>
    tpu.vector_store %arg6[%c0_92, %c0_93], %286 {strides = array<i32>} : memref<8x256xf32, #tpu.memory_space<vmem>>, vector<8x128xf32>,
    %c24 = arith.constant 24 : index
    %c0_94 = arith.constant 0 : index
    %288 = vector.load %arg5[%c24, %c0_94] : memref<26x128xf32, #tpu.memory_space<vmem>>, vector<1x128xf32>
    %c25 = arith.constant 25 : index
    %c0_95 = arith.constant 0 : index
    %289 = vector.load %arg5[%c25, %c0_95] : memref<26x128xf32, #tpu.memory_space<vmem>>, vector<1x128xf32>
    %290 = vector.broadcast %12 : vector<1x128xf32> to vector<8x128xf32>
    %291 = arith.mulf %258, %290 : vector<8x128xf32>
    %cst_96 = arith.constant dense<0.000000e+00> : vector<8xf32>
    %292 = vector.multi_reduction <add>, %291, %cst_96 [1] : vector<8x128xf32> to vector<8xf32>
    %293 = vector.shape_cast %292 : vector<8xf32> to vector<8x1xf32>
    %cst_97 = arith.constant 3.125000e-02 : f32
    %294 = vector.broadcast %cst_97 : f32 to vector<8x1xf32>
    %295 = arith.mulf %293, %294 : vector<8x1xf32>
    %296 = vector.broadcast %295 : vector<8x1xf32> to vector<8x128xf32>
    %297 = arith.subf %258, %296 : vector<8x128xf32>
    %298 = vector.broadcast %12 : vector<1x128xf32> to vector<8x128xf32>
    %299 = arith.mulf %297, %298 : vector<8x128xf32>
    %300 = arith.mulf %299, %299 : vector<8x128xf32>
    %cst_98 = arith.constant dense<0.000000e+00> : vector<8xf32>
    %301 = vector.multi_reduction <add>, %300, %cst_98 [1] : vector<8x128xf32> to vector<8xf32>
    %302 = vector.shape_cast %301 : vector<8xf32> to vector<8x1xf32>
    %cst_99 = arith.constant 3.125000e-02 : f32
    %303 = vector.broadcast %cst_99 : f32 to vector<8x1xf32>
    %304 = arith.mulf %302, %303 : vector<8x1xf32>
    %cst_100 = arith.constant 9.99999974E-6 : f32
    %305 = vector.broadcast %cst_100 : f32 to vector<8x1xf32>
    %306 = arith.addf %304, %305 : vector<8x1xf32>
    %307 = math.rsqrt %306 : vector<8x1xf32>
    %308 = vector.broadcast %295 : vector<8x1xf32> to vector<8x128xf32>
    %309 = arith.subf %258, %308 : vector<8x128xf32>
    %310 = vector.broadcast %307 : vector<8x1xf32> to vector<8x128xf32>
    %311 = arith.mulf %309, %310 : vector<8x128xf32>
    %312 = vector.broadcast %288 : vector<1x128xf32> to vector<8x128xf32>
    %313 = arith.mulf %311, %312 : vector<8x128xf32>
    %314 = vector.broadcast %289 : vector<1x128xf32> to vector<8x128xf32>
    %315 = arith.addf %313, %314 : vector<8x128xf32>
    %c0_101 = arith.constant 0 : index
    %c128_102 = arith.constant 128 : index
    %316 = vector.load %arg6[%c0_101, %c128_102] : memref<8x256xf32, #tpu.memory_space<vmem>>, vector<8x128xf32>
    tpu.vector_store %arg6[%c0_101, %c128_102], %315 {strides = array<i32>} : memref<8x256xf32, #tpu.memory_space<vmem>>, vector<8x128xf32>,
    return
  }
}

</mosaic_0001>

<bundles_post_ra>
// kernel: tpu_custom_call.1
= control target key start
LH: loop header
LB: loop body
LE: loop exit
PB: predicated region body
PF: predicated region fallthrough
CT: control target
= control target key end

     0   :  { %11 = vsyncpa [#allocation3], 0  ;;  %s1895_s0 = inlined_call_operand.hbm [shape: f32[8,384], index: 0, kind: input, shape index: {}]   ;;  %s1896_s1 = inlined_call_operand.hbm [shape: bf16[128,256], index: 1, kind: input, shape index: {}]   ;;  %s1897_s2 = inlined_call_operand.hbm [shape: bf16[128,256], index: 2, kind: input, shape index: {}]   ;;  %s1898_s3 = inlined_call_operand.hbm [shape: bf16[128,256], index: 3, kind: input, shape index: {}]   ;;  %s1899_s4 = inlined_call_operand.hbm [shape: bf16[128,256], index: 4, kind: input, shape index: {}]   ;;  %s1900_s5 = inlined_call_operand.hbm [shape: f32[26,128], index: 5, kind: input, shape index: {}]   ;;  %s1901_s6 = inlined_call_operand.hbm [shape: f32[8,256], index: 6, kind: output, shape index: {}]  }
   0x1   :  { %12 = vsyncpa [#allocation6], 0 }
   0x2   :  { %13 = vsyncpa [#allocation9], 0 }
   0x3   :  { %14 = vsyncpa [#allocation12], 0 }
   0x4   :  { %15 = vsyncpa [#allocation4], 0  ;;  %s1744_s21 = smov [#allocation5]  }
   0x5   :  { %s31_s22 = sshll.u32 %s1744_s21, 4  ;;  %s32_s22 = int_to_ptr.vmem [resolvable:$true] %s31_s22 }
   0x6   :  { %s1602_s23 = scalar_lea.vmem %s32_s22, 2048  ;;  %p1607_p1 = scmp.lt.s32.totalorder %s32_s22, %s32_s22 }
   0x7   :  { %p1603_p0 = scmp.ne.s32.totalorder %s32_s22, %s1602_s23  ;;  %p1608_p2 = scmp.lt.s32.totalorder %s1602_s23, %s1602_s23 }
   0x9   :  { %p1609_p3 = por %p1608_p2, %p1607_p1 }
   0xb   :  { %p1610_p4 = pnand %p1609_p3, %p1603_p0 }
   0xd   :  { %1613 = shalt.err (!%p1610_p4)
}
   0xe   :  { %s1745_s24 = smov 128   ;;  %s1746_s25 = smov 8  }
   0xf   :  { %37 = dma.hbm_to_vmem [thread:$0]  %s1896_s1, 2048, %s32_s22, [#allocation6], %s1745_s24, %s1745_s24, %s1746_s25  }
  0x10   :  { %s1747_s28 = smov [#allocation8]   ;;  %s1748_s30 = smov [#allocation2]  }
  0x11   :  { %s55_s29 = sshll.u32 %s1747_s28, 4  ;;  %s22_s7 = sshll.u32 %s1748_s30, 4  ;;  %s56_s29 = int_to_ptr.vmem [resolvable:$true] %s55_s29  ;;  %s23_s7 = int_to_ptr.vmem [resolvable:$true] %s22_s7 }
  0x12   :  { %s1622_s8 = scalar_lea.vmem %s56_s29, 2048  ;;  %p1627_p6 = scmp.lt.s32.totalorder %s56_s29, %s56_s29 }
  0x13   :  { %p1623_p5 = scmp.ne.s32.totalorder %s56_s29, %s1622_s8  ;;  %p1628_p7 = scmp.lt.s32.totalorder %s1622_s8, %s1622_s8 }
  0x15   :  { %p1629_p8 = por %p1628_p7, %p1627_p6 }
  0x17   :  { %p1630_p9 = pnand %p1629_p8, %p1623_p5 }
  0x19   :  { %1633 = shalt.err (!%p1630_p9)
}
  0x1a   :  { %61 = dma.hbm_to_vmem [thread:$0]  %s1898_s3, 2048, %s56_s29, [#allocation9], %s1745_s24, %s1745_s24, %s1746_s25  }
  0x1b   :  { %s1642_s1 = scalar_lea.vmem %s23_s7, 384  ;;  %p1647_p11 = scmp.lt.s32.totalorder %s23_s7, %s23_s7 }
  0x1c   :  { %p1643_p10 = scmp.ne.s32.totalorder %s23_s7, %s1642_s1  ;;  %p1648_p12 = scmp.lt.s32.totalorder %s1642_s1, %s1642_s1 }
  0x1e   :  { %p1649_p13 = por %p1648_p12, %p1647_p11 }
  0x20   :  { %p1650_p0 = pnand %p1649_p13, %p1643_p10 }
  0x22   :  { %1653 = shalt.err (!%p1650_p0)
}
  0x23   :  { %25 = dma.hbm_to_vmem [thread:$0]  %s1895_s0, 384, %s23_s7, [#allocation3]  }
  0x24   :  { %s1749_s13 = smov [#allocation7]   ;;  %s1750_s15 = smov [#allocation10]  }
  0x25   :  { %s43_s14 = sshll.u32 %s1749_s13, 4  ;;  %s67_s16 = sshll.u32 %s1750_s15, 4  ;;  %s44_s14 = int_to_ptr.vmem [resolvable:$true] %s43_s14  ;;  %s68_s16 = int_to_ptr.vmem [resolvable:$true] %s67_s16 }
  0x26   :  { %s1662_s17 = scalar_lea.vmem %s44_s14, 2048  ;;  %p1667_p2 = scmp.lt.s32.totalorder %s44_s14, %s44_s14 }
  0x27   :  { %p1663_p1 = scmp.ne.s32.totalorder %s44_s14, %s1662_s17  ;;  %p1668_p3 = scmp.lt.s32.totalorder %s1662_s17, %s1662_s17 }
  0x29   :  { %p1669_p4 = por %p1668_p3, %p1667_p2 }
  0x2b   :  { %p1670_p5 = pnand %p1669_p4, %p1663_p1 }
  0x2d   :  { %1673 = shalt.err (!%p1670_p5)
}
  0x2e   :  { %49 = dma.hbm_to_vmem [thread:$0]  %s1897_s2, 2048, %s44_s14, [#allocation6], %s1745_s24, %s1745_s24, %s1746_s25  }
  0x2f   :  { %s1682_s0 = scalar_lea.vmem %s68_s16, 2048  ;;  %p1687_p7 = scmp.lt.s32.totalorder %s68_s16, %s68_s16 }
  0x30   :  { %p1683_p6 = scmp.ne.s32.totalorder %s68_s16, %s1682_s0  ;;  %p1688_p8 = scmp.lt.s32.totalorder %s1682_s0, %s1682_s0 }
  0x32   :  { %p1689_p9 = por %p1688_p8, %p1687_p7 }
  0x34   :  { %p1690_p10 = pnand %p1689_p9, %p1683_p6 }
  0x36   :  { %1693 = shalt.err (!%p1690_p10)
}
  0x37   :  { %73 = dma.hbm_to_vmem [thread:$0]  %s1899_s4, 2048, %s68_s16, [#allocation9], %s1745_s24, %s1745_s24, %s1746_s25  }
  0x38   :  { %s1751_s21 = smov [#allocation11]  }
  0x39   :  { %s79_s22 = sshll.u32 %s1751_s21, 4  ;;  %s80_s22 = int_to_ptr.vmem [resolvable:$true] %s79_s22 }
  0x3a   :  { %s1702_s23 = scalar_lea.vmem %s80_s22, 512  ;;  %p1707_p12 = scmp.lt.s32.totalorder %s80_s22, %s80_s22 }
  0x3b   :  { %p1703_p11 = scmp.ne.s32.totalorder %s80_s22, %s1702_s23  ;;  %p1708_p13 = scmp.lt.s32.totalorder %s1702_s23, %s1702_s23 }
  0x3d   :  { %p1709_p0 = por %p1708_p13, %p1707_p12 }
  0x3f   :  { %p1710_p1 = pnand %p1709_p0, %p1703_p11 }
  0x41   :  { %1713 = shalt.err (!%p1710_p1)
}
  0x42   :  { %85 = dma.hbm_to_vmem [thread:$0]  %s1900_s5, 512, %s80_s22, [#allocation12], %s1745_s24, %s1745_s24, %s1746_s25  }
  0x43   :  { %1734 = dma.done.wait [#allocation3], 384  }
  0x44   :  { %1735 = vsyncadd [#allocation3], 4294966912 }
  0x45   :  { %1736 = dma.done.wait [#allocation6], 4096  }
  0x46   :  { %1737 = vsyncadd [#allocation6], 4294963200 }
  0x47   :  { %1738 = dma.done.wait [#allocation9], 4096  }
  0x48   :  { %1739 = vsyncadd [#allocation9], 4294963200 }
  0x49   :  { %1740 = dma.done.wait [#allocation12], 512  }
  0x4a   :  { %1741 = vsyncadd [#allocation12], 4294966784  ;;  %v1752_v0 = vmov 0.0   ;;  %vm1753_vm0 = vmmov 0   ;;  %v1496_v1 = vld [vmem:[#allocation5 + $0x70] ss:$8 sps:$4 sm:$0xff]  }
  0x4b   :  { %1364 = vmatprep.subr.bf16.mxu0 %v1752_v0  ;;  %1380 = vmatprep.mubr.msk.bf16.mxu0 %vm1753_vm0, %v1752_v0  ;;  %v1497_v2 = vld [vmem:[#allocation5 + $0x60] ss:$8 sps:$4 sm:$0xff]   ;;  %v1498_v3 = vld [vmem:[#allocation5 + $0x50] ss:$8 sps:$4 sm:$0xff]   ;;  %v1504_v10 = vld [vmem:[#allocation5 + $0x74] ss:$8 sps:$4 sm:$0xff]  }
  0x4c   :  { %1384 = vmatprep.subr.bf16.mxu1 %v1752_v0  ;;  %1400 = vmatprep.mubr.msk.bf16.mxu1 %vm1753_vm0, %v1752_v0  ;;  %v1499_v4 = vld [vmem:[#allocation5 + $0x40] ss:$8 sps:$4 sm:$0xff]   ;;  %v1500_v5 = vld [vmem:[#allocation5 + $0x30] ss:$8 sps:$4 sm:$0xff]   ;;  %v1505_v12 = vld [vmem:[#allocation5 + $0x64] ss:$8 sps:$4 sm:$0xff]  }
  0x4d   :  { %1365 = vmatpush3.bf16.msra.mxu0 %v1496_v1  ;;  %v1501_v6 = vld [vmem:[#allocation5 + $0x20] ss:$8 sps:$4 sm:$0xff]   ;;  %v1502_v7 = vld [vmem:[#allocation5 + $0x10] ss:$8 sps:$4 sm:$0xff]   ;;  %v1506_v13 = vld [vmem:[#allocation5 + $0x54] ss:$8 sps:$4 sm:$0xff]  }
  0x4e   :  { %1366 = vmatprep.subr.bf16.mxu0 %v1752_v0  ;;  %v1503_v8 = vld [vmem:[#allocation5] ss:$8 sps:$4 sm:$0xff]   ;;  %v1507_v14 = vld [vmem:[#allocation5 + $0x44] ss:$8 sps:$4 sm:$0xff]   ;;  %v1508_v15 = vld [vmem:[#allocation5 + $0x34] ss:$8 sps:$4 sm:$0xff]  }
  0x4f   :  { %v116_v9 = vld [vmem:[#allocation2] sm:$0xff]  ;;  %v1510_v17 = vld [vmem:[#allocation5 + $0x14] ss:$8 sps:$4 sm:$0xff]   ;;  %v1512_v21 = vld [vmem:[#allocation7 + $0x70] ss:$8 sps:$4 sm:$0xff]   ;;  %s1755_s4 = smov [#allocation13]  }
  0x50   :  { %v117_v11 = vpack.c.bf16 %v116_v9, %v116_v9  ;;  %v1509_v16 = vld [vmem:[#allocation5 + $0x24] ss:$8 sps:$4 sm:$0xff]   ;;  %v118_v19 = vld [vmem:[#allocation2 + $0x8] sm:$0xff]  ;;  %1385 = vmatpush3.bf16.msra.mxu1 %v1512_v21  ;;  %v1513_v22 = vld [vmem:[#allocation7 + $0x60] ss:$8 sps:$4 sm:$0xff]   ;;  %s1203_s5 = sshll.u32 %s1755_s4, 4  ;;  %s1204_s5 = int_to_ptr.vmem [resolvable:$true] %s1203_s5 }
  0x51   :  { %1367 = vmatpush3.bf16.msra.mxu0 %v1497_v2  ;;  %v1511_v18 = vld [vmem:[#allocation5 + $0x4] ss:$8 sps:$4 sm:$0xff]   ;;  %v119_v20 = vpack.c.bf16 %v118_v19, %v118_v19  ;;  %1386 = vmatprep.subr.bf16.mxu1 %v1752_v0  ;;  %v1514_v23 = vld [vmem:[#allocation7 + $0x50] ss:$8 sps:$4 sm:$0xff]   ;;  %v1515_v24 = vld [vmem:[#allocation7 + $0x40] ss:$8 sps:$4 sm:$0xff]   ;;  %p1719_p3 = scmp.lt.s32.totalorder %s1204_s5, %s1204_s5 }
  0x52   :  { %1368 = vmatprep.subr.bf16.mxu0 %v1752_v0  ;;  %v1516_v25 = vld [vmem:[#allocation7 + $0x30] ss:$8 sps:$4 sm:$0xff]   ;;  %v1517_v26 = vld [vmem:[#allocation7 + $0x20] ss:$8 sps:$4 sm:$0xff]   ;;  %v1240_v49 = vld [vmem:[#allocation11 + $0x6] ss:$0 sm:$0xff] }
  0x53   :  { %v1518_v27 = vld [vmem:[#allocation7 + $0x10] ss:$8 sps:$4 sm:$0xff]   ;;  %v1519_v28 = vld [vmem:[#allocation7] ss:$8 sps:$4 sm:$0xff]   ;;  %v1522_v19 = vld [vmem:[#allocation7 + $0x54] ss:$8 sps:$4 sm:$0xff]  }
  0x54   :  { %1387 = vmatpush3.bf16.msra.mxu1 %v1513_v22  ;;  %v1218_v29 = vld [vmem:[#allocation11] ss:$0 sm:$0xff]  ;;  %v1523_v22 = vld [vmem:[#allocation7 + $0x44] ss:$8 sps:$4 sm:$0xff]   ;;  %s1714_s24 = scalar_lea.vmem %s1204_s5, 256 }
  0x55   :  { %1369 = vmatpush3.bf16.msra.mxu0 %v1498_v3  ;;  %1388 = vmatprep.subr.bf16.mxu1 %v1752_v0  ;;  %p1715_p2 = scmp.ne.s32.totalorder %s1204_s5, %s1714_s24  ;;  %p1720_p4 = scmp.lt.s32.totalorder %s1714_s24, %s1714_s24 }
  0x56   :  { %1370 = vmatprep.subr.bf16.mxu0 %v1752_v0 }
  0x57   :  { %p1721_p5 = por %p1720_p4, %p1719_p3 }
  0x58   :  { %1389 = vmatpush3.bf16.msra.mxu1 %v1514_v23  ;;  %v1524_v23 = vld [vmem:[#allocation7 + $0x34] ss:$8 sps:$4 sm:$0xff]  }
  0x59   :  { %1371 = vmatpush3.bf16.msra.mxu0 %v1499_v4  ;;  %1390 = vmatprep.subr.bf16.mxu1 %v1752_v0  ;;  %v1227_v4 = vld [vmem:[#allocation11 + $0x1] ss:$0 sm:$0xff]  ;;  %p1722_p6 = pnand %p1721_p5, %p1715_p2 }
  0x5a   :  { %1372 = vmatprep.subr.bf16.mxu0 %v1752_v0 }
  0x5c   :  { %1391 = vmatpush3.bf16.msra.mxu1 %v1515_v24  ;;  %v1525_v24 = vld [vmem:[#allocation7 + $0x24] ss:$8 sps:$4 sm:$0xff]  }
  0x5d   :  { %1373 = vmatpush3.bf16.msra.mxu0 %v1500_v5  ;;  %1392 = vmatprep.subr.bf16.mxu1 %v1752_v0 }
  0x5e   :  { %1374 = vmatprep.subr.bf16.mxu0 %v1752_v0 }
  0x60   :  { %1393 = vmatpush3.bf16.msra.mxu1 %v1516_v25  ;;  %v1526_v25 = vld [vmem:[#allocation7 + $0x14] ss:$8 sps:$4 sm:$0xff]  }
  0x61   :  { %1375 = vmatpush3.bf16.msra.mxu0 %v1501_v6  ;;  %1394 = vmatprep.subr.bf16.mxu1 %v1752_v0 }
  0x62   :  { %1376 = vmatprep.subr.bf16.mxu0 %v1752_v0 }
  0x64   :  { %1395 = vmatpush3.bf16.msra.mxu1 %v1517_v26 }
  0x65   :  { %1377 = vmatpush3.bf16.msra.mxu0 %v1502_v7  ;;  %1396 = vmatprep.subr.bf16.mxu1 %v1752_v0  ;;  %v1228_v7 = vld [vmem:[#allocation11 + $0x2] ss:$0 sm:$0xff] }
  0x66   :  { %1378 = vmatprep.subr.bf16.mxu0 %v1752_v0 }
  0x68   :  { %1397 = vmatpush3.bf16.msra.mxu1 %v1518_v27  ;;  %v1249_v27 = vld [vmem:[#allocation11 + $0x7] ss:$0 sm:$0xff] }
  0x69   :  { %1379 = vmatpush3.bf16.msra.mxu0 %v1503_v8  ;;  %1398 = vmatprep.subr.bf16.mxu1 %v1752_v0 }
  0x6a   :  { %1404 = vmatprep.subr.bf16.mxu0 %v1752_v0 }
  0x6c   :  { %1381 = vmatmul.mubr.bf16.vlgmr.msra.gmra.mxu0 %v117_v11  ;;  %1399 = vmatpush3.bf16.msra.mxu1 %v1519_v28 }
  0x6d   :  { %1405 = vmatpush3.bf16.msra.mxu0 %v1504_v10  ;;  %1420 = vmatprep.mubr.msk.bf16.mxu0 %vm1753_vm0, %v1752_v0 }
  0x6e   :  { %1406 = vmatprep.subr.bf16.mxu0 %v1752_v0  ;;  %1424 = vmatprep.subr.bf16.mxu1 %v1752_v0 }
  0x71   :  { %1407 = vmatpush3.bf16.msra.mxu0 %v1505_v12  ;;  %v1520_v12 = vld [vmem:[#allocation7 + $0x74] ss:$8 sps:$4 sm:$0xff]  }
  0x72   :  { %1408 = vmatprep.subr.bf16.mxu0 %v1752_v0 }
  0x75   :  { %1409 = vmatpush3.bf16.msra.mxu0 %v1506_v13 }
  0x76   :  { %1410 = vmatprep.subr.bf16.mxu0 %v1752_v0 }
  0x79   :  { %1411 = vmatpush3.bf16.msra.mxu0 %v1507_v14 }
  0x7a   :  { %1412 = vmatprep.subr.bf16.mxu0 %v1752_v0 }
  0x7d   :  { %1413 = vmatpush3.bf16.msra.mxu0 %v1508_v15 }
  0x7e   :  { %1414 = vmatprep.subr.bf16.mxu0 %v1752_v0 }
  0x81   :  { %1415 = vmatpush3.bf16.msra.mxu0 %v1509_v16  ;;  %v1521_v16 = vld [vmem:[#allocation7 + $0x64] ss:$8 sps:$4 sm:$0xff]  }
  0x82   :  { %1416 = vmatprep.subr.bf16.mxu0 %v1752_v0 }
  0x85   :  { %1417 = vmatpush3.bf16.msra.mxu0 %v1510_v17 }
  0x86   :  { %1418 = vmatprep.subr.bf16.mxu0 %v1752_v0 }
  0x89   :  { %1419 = vmatpush3.bf16.msra.mxu0 %v1511_v18 }
  0x8c   :  { %1421 = vmatmul.mubr.bf16.vlgmr.msra.gmra.mxu0 %v119_v20 }
 0x12c   :  { %v224_v30 = vpop.f32.mrf.mxu0 }
 0x12d   :  { %v225_v31 = vadd.f32 %v1218_v29, %v224_v30  ;;  %v1527_v29 = vld [vmem:[#allocation7 + $0x4] ss:$8 sps:$4 sm:$0xff]   ;;  %v1250_v30 = vld [vmem:[#allocation11 + $0x8] ss:$0 sm:$0xff] }
 0x12e   :  { %v1382_v32 = vpop.f32.mrf.mxu0 }
 0x12f   :  { %v232_v33 = vrot.slane %v225_v31, 4 }
 0x130   :  { %v227_v34 = vpop.f32.mrf.mxu0 }
 0x131   :  { %v233_v35 = vadd.f32 %v232_v33, %v225_v31  ;;  %v1229_v34 = vld [vmem:[#allocation11 + $0x3] ss:$0 sm:$0xff] }
 0x132   :  { %v1383_v36 = vpop.f32.mrf.mxu0 }
 0x133   :  { %v234_v37 = vrot.slane %v233_v35, 2 }
 0x135   :  { %v235_v38 = vadd.f32 %v234_v37, %v233_v35 }
 0x137   :  { %v236_v39 = vrot.slane %v235_v38, 1 }
 0x139   :  { %v237_v40 = vadd.f32 %v236_v39, %v235_v38 }
 0x13b   :  { %v239_v41 = vmul.f32 0.125, %v237_v40 }
 0x13d   :  { %v240_v42 = vsub.f32 %v225_v31, %v239_v41 }
 0x13f   :  { %v241_v43 = vmul.f32 %v240_v42, %v240_v42 }
 0x141   :  { %v242_v44 = vrot.slane %v241_v43, 4 }
 0x143   :  { %v243_v45 = vadd.f32 %v242_v44, %v241_v43 }
 0x145   :  { %v244_v46 = vrot.slane %v243_v45, 2 }
 0x147   :  { %v245_v47 = vadd.f32 %v244_v46, %v243_v45 }
 0x149   :  { %v246_v48 = vrot.slane %v245_v47, 1 }
 0x14b   :  { %v247_v50 = vadd.f32 %v246_v48, %v245_v47 }
 0x14c   :  { %v506_v51 = vpop.f32.mrf.mxu0 }
 0x14d   :  { %v248_v52 = vmul.f32 0.125, %v247_v50  ;;  %v507_v53 = vadd.f32 %v1240_v49, %v506_v51 }
 0x14e   :  { %v1422_v54 = vpop.f32.mrf.mxu0 }
 0x14f   :  { %v249_v55 = vadd.f32 1e-05, %v248_v52  ;;  %v514_v56 = vrot.slane %v507_v53, 4  ;;  %v1251_v52 = vld [vmem:[#allocation11 + $0x9] ss:$0 sm:$0xff] }
 0x150   :  { %v509_v57 = vpop.f32.mrf.mxu0 }
 0x151   :  { %1568 = vrsqrt.f32 %v249_v55  ;;  %v515_v58 = vadd.f32 %v514_v56, %v507_v53 }
 0x152   :  { %v1423_v59 = vpop.f32.mrf.mxu0 }
 0x153   :  { %v516_v60 = vrot.slane %v515_v58, 2 }
 0x155   :  { %v517_v61 = vadd.f32 %v516_v60, %v515_v58 }
 0x157   :  { %v518_v62 = vrot.slane %v517_v61, 1 }
 0x159   :  { %v519_v63 = vadd.f32 %v518_v62, %v517_v61 }
 0x15b   :  { %v520_v1 = vmul.f32 0.125, %v519_v63 }
 0x15d   :  { %v521_v2 = vsub.f32 %v507_v53, %v520_v1 }
 0x15e   :  { %v1569_v3 = vpop.eup %1568 }
 0x15f   :  { %v251_v5 = vmul.f32 %v1569_v3, %v240_v42  ;;  %v522_v6 = vmul.f32 %v521_v2, %v521_v2 }
 0x161   :  { %v523_v8 = vrot.slane %v522_v6, 4  ;;  %v256_v9 = vmul.f32 %v1227_v4, %v251_v5 }
 0x163   :  { %v524_v10 = vadd.f32 %v523_v8, %v522_v6  ;;  %v261_v11 = vadd.f32 %v1228_v7, %v256_v9 }
 0x165   :  { %v525_v13 = vrot.slane %v524_v10, 2  ;;  %v262_v14 = vpack.c.bf16 %v261_v11, %v261_v11 }
 0x167   :  { %v526_v15 = vadd.f32 %v525_v13, %v524_v10  ;;  %1401 = vmatmul.mubr.bf16.vlgmr.msra.gmra.mxu1 %v262_v14 }
 0x168   :  { %1425 = vmatpush3.bf16.msra.mxu1 %v1520_v12  ;;  %1440 = vmatprep.mubr.msk.bf16.mxu1 %vm1753_vm0, %v1752_v0 }
 0x169   :  { %v527_v17 = vrot.slane %v526_v15, 1  ;;  %1426 = vmatprep.subr.bf16.mxu1 %v1752_v0 }
 0x16b   :  { %v528_v18 = vadd.f32 %v527_v17, %v526_v15 }
 0x16c   :  { %1427 = vmatpush3.bf16.msra.mxu1 %v1521_v16 }
 0x16d   :  { %v529_v20 = vmul.f32 0.125, %v528_v18  ;;  %1428 = vmatprep.subr.bf16.mxu1 %v1752_v0 }
 0x16f   :  { %v530_v21 = vadd.f32 1e-05, %v529_v20 }
 0x170   :  { %1429 = vmatpush3.bf16.msra.mxu1 %v1522_v19  ;;  %v1238_v19 = vld [vmem:[#allocation11 + $0x4] ss:$0 sm:$0xff] }
 0x171   :  { %1570 = vrsqrt.f32 %v530_v21  ;;  %1430 = vmatprep.subr.bf16.mxu1 %v1752_v0  ;;  %v1239_v21 = vld [vmem:[#allocation11 + $0x5] ss:$0 sm:$0xff] }
 0x174   :  { %1431 = vmatpush3.bf16.msra.mxu1 %v1523_v22 }
 0x175   :  { %1432 = vmatprep.subr.bf16.mxu1 %v1752_v0 }
 0x178   :  { %1433 = vmatpush3.bf16.msra.mxu1 %v1524_v23 }
 0x179   :  { %1434 = vmatprep.subr.bf16.mxu1 %v1752_v0 }
 0x17c   :  { %1435 = vmatpush3.bf16.msra.mxu1 %v1525_v24 }
 0x17d   :  { %1436 = vmatprep.subr.bf16.mxu1 %v1752_v0 }
 0x17e   :  { %v1571_v26 = vpop.eup %1570 }
 0x17f   :  { %v532_v28 = vmul.f32 %v1571_v26, %v521_v2 }
 0x180   :  { %1437 = vmatpush3.bf16.msra.mxu1 %v1526_v25  ;;  %v1260_v25 = vld [vmem:[#allocation11 + $0xa] ss:$0 sm:$0xff] }
 0x181   :  { %v537_v31 = vmul.f32 %v1249_v27, %v532_v28  ;;  %1438 = vmatprep.subr.bf16.mxu1 %v1752_v0  ;;  %v1261_v27 = vld [vmem:[#allocation11 + $0xb] ss:$0 sm:$0xff] }
 0x183   :  { %v542_v32 = vadd.f32 %v1250_v30, %v537_v31 }
 0x184   :  { %1439 = vmatpush3.bf16.msra.mxu1 %v1527_v29 }
 0x185   :  { %v543_v33 = vpack.c.bf16 %v542_v32, %v542_v32  ;;  %1444 = vmatprep.subr.bf16.mxu1 %v1752_v0 }
 0x187   :  { %1441 = vmatmul.mubr.bf16.vlgmr.msra.gmra.mxu1 %v543_v33 }
 0x188   :  { %1460 = vmatprep.mubr.msk.bf16.mxu1 %vm1753_vm0, %v1752_v0 }
 0x227   :  { %v366_v35 = vpop.f32.mrf.mxu1 }
 0x228   :  { %v367_v36 = vadd.f32 %v1229_v34, %v366_v35  ;;  %v105_v35 = vlaneseq }
 0x229   :  { %v1402_v37 = vpop.f32.mrf.mxu1 }
 0x22a   :  { %v374_v38 = vrot.slane %v367_v36, 4 }
 0x22b   :  { %v369_v39 = vpop.f32.mrf.mxu1 }
 0x22c   :  { %v375_v40 = vadd.f32 %v374_v38, %v367_v36 }
 0x22d   :  { %v1403_v41 = vpop.f32.mrf.mxu1 }
 0x22e   :  { %v376_v42 = vrot.slane %v375_v40, 2  ;;  %v120_v41 = vld [vmem:[#allocation2 + $0x10] sm:$0xff] }
 0x230   :  { %v377_v43 = vadd.f32 %v376_v42, %v375_v40 }
 0x232   :  { %v378_v44 = vrot.slane %v377_v43, 1 }
 0x234   :  { %v379_v45 = vadd.f32 %v378_v44, %v377_v43 }
 0x236   :  { %v380_v46 = vmul.f32 0.125, %v379_v45 }
 0x238   :  { %v381_v47 = vsub.f32 %v367_v36, %v380_v46  ;;  %v1867_v36 = vand.u32 127, %v105_v35  ;;  %v1528_v46 = vld [vmem:[#allocation8 + $0x70] ss:$8 sps:$4 sm:$0xff]  }
 0x23a   :  { %v382_v48 = vmul.f32 %v381_v47, %v381_v47  ;;  %vm110_vm1 = vcmp.lt.s32.totalorder %v1867_v36, 16  ;;  %vm107_vm2 = vcmp.lt.s32.totalorder %v1867_v36, 100  ;;  %vm113_vm3 = vcmp.lt.s32.totalorder %v1867_v36, 32 }
 0x23b   :  { %v1216_v43 = vsel %vm110_vm1, 1.0, %v1752_v0 }
 0x23c   :  { %v383_v49 = vrot.slane %v382_v48, 4 }
 0x23e   :  { %v384_v50 = vadd.f32 %v383_v49, %v382_v48  ;;  %v1533_v48 = vld [vmem:[#allocation8 + $0x64] ss:$8 sps:$4 sm:$0xff]   ;;  %v1531_v49 = vld [vmem:[#allocation8 + $0x60] ss:$8 sps:$4 sm:$0xff]  }
 0x240   :  { %v385_v51 = vrot.slane %v384_v50, 2 }
 0x242   :  { %v386_v54 = vadd.f32 %v385_v51, %v384_v50 }
 0x244   :  { %v387_v59 = vrot.slane %v386_v54, 1 }
 0x246   :  { %v388_v63 = vadd.f32 %v387_v59, %v386_v54  ;;  %v1542_v59 = vld [vmem:[#allocation8 + $0x34] ss:$8 sps:$4 sm:$0xff]  }
 0x247   :  { %v647_v53 = vpop.f32.mrf.mxu1 }
 0x248   :  { %v648_v55 = vadd.f32 %v1251_v52, %v647_v53  ;;  %v389_v3 = vmul.f32 0.125, %v388_v63  ;;  %v1543_v63 = vld [vmem:[#allocation8 + $0x20] ss:$8 sps:$4 sm:$0xff]  }
 0x249   :  { %v1442_v56 = vpop.f32.mrf.mxu1 }
 0x24a   :  { %v655_v57 = vrot.slane %v648_v55, 4  ;;  %v390_v6 = vadd.f32 1e-05, %v389_v3  ;;  %v1534_v56 = vld [vmem:[#allocation8 + $0x50] ss:$8 sps:$4 sm:$0xff]  }
 0x24b   :  { %v650_v58 = vpop.f32.mrf.mxu1  ;;  %v1551_v3 = vld [vmem:[#allocation8 + $0x4] ss:$8 sps:$4 sm:$0xff]  }
 0x24c   :  { %v656_v60 = vadd.f32 %v655_v57, %v648_v55  ;;  %1572 = vrsqrt.f32 %v390_v6  ;;  %v1537_v57 = vld [vmem:[#allocation8 + $0x40] ss:$8 sps:$4 sm:$0xff]   ;;  %v1539_v58 = vld [vmem:[#allocation8 + $0x44] ss:$8 sps:$4 sm:$0xff]  }
 0x24d   :  { %v1443_v61 = vpop.f32.mrf.mxu1 }
 0x24e   :  { %v657_v62 = vrot.slane %v656_v60, 2  ;;  %v1545_v61 = vld [vmem:[#allocation8 + $0x24] ss:$8 sps:$4 sm:$0xff]  }
 0x250   :  { %v658_v1 = vadd.f32 %v657_v62, %v656_v60  ;;  %v1540_v60 = vld [vmem:[#allocation8 + $0x30] ss:$8 sps:$4 sm:$0xff]   ;;  %v1754_v62 = vmov 0  }
 0x251   :  { %854 = vmatprep.mubr.bf16.mxu0 %v1754_v62  ;;  %v1284_v62 = vld [vmem:[#allocation11 + $0x10] ss:$0 sm:$0xff] }
 0x252   :  { %v659_v2 = vrot.slane %v658_v1, 1 }
 0x254   :  { %v660_v4 = vadd.f32 %v659_v2, %v658_v1  ;;  %v1548_v1 = vld [vmem:[#allocation8 + $0x14] ss:$8 sps:$4 sm:$0xff]   ;;  %v1546_v2 = vld [vmem:[#allocation8 + $0x10] ss:$8 sps:$4 sm:$0xff]  }
 0x256   :  { %v661_v5 = vmul.f32 0.125, %v660_v4  ;;  %v1549_v4 = vld [vmem:[#allocation8] ss:$8 sps:$4 sm:$0xff]  }
 0x258   :  { %v662_v7 = vsub.f32 %v648_v55, %v661_v5  ;;  %v1536_v55 = vld [vmem:[#allocation8 + $0x54] ss:$8 sps:$4 sm:$0xff]  }
 0x259   :  { %v1573_v16 = vpop.eup %1572 }
 0x25a   :  { %v663_v8 = vmul.f32 %v662_v7, %v662_v7  ;;  %v392_v18 = vmul.f32 %v1573_v16, %v381_v47  ;;  %v1530_v47 = vld [vmem:[#allocation8 + $0x74] ss:$8 sps:$4 sm:$0xff]  }
 0x25b   :  { %822 = vmatprep.subr.bf16.mxu0 %v1530_v47  ;;  %v1562_v47 = vld [vmem:[#allocation10 + $0x34] ss:$8 sps:$4 sm:$0xff]  }
 0x25c   :  { %v664_v9 = vrot.slane %v663_v8, 4  ;;  %v397_v20 = vmul.f32 %v1238_v19, %v392_v18  ;;  %823 = vmatpush1.bf16.msra.mxu0 %v1528_v46  ;;  %v1215_v18 = vsel %vm107_vm2, 1.0, %v1752_v0  ;;  %v1561_v46 = vld [vmem:[#allocation10 + $0x20] ss:$8 sps:$4 sm:$0xff]  }
 0x25d   :  { %824 = vmatprep.subr.bf16.mxu0 %v1533_v48  ;;  %v1563_v48 = vld [vmem:[#allocation10 + $0x10] ss:$8 sps:$4 sm:$0xff]  }
 0x25e   :  { %v665_v10 = vadd.f32 %v664_v9, %v663_v8  ;;  %v402_v22 = vadd.f32 %v1239_v21, %v397_v20  ;;  %v1264_v9 = vld [vmem:[#allocation11 + $0xc] ss:$0 sm:$0xff] }
 0x260   :  { %v666_v11 = vrot.slane %v665_v10, 2  ;;  %v1262_v23 = vmul.f32 -1.442695, %v402_v22  ;;  %825 = vmatpush1.bf16.msra.mxu0 %v1531_v49  ;;  %v1564_v49 = vld [vmem:[#allocation10 + $0x24] ss:$8 sps:$4 sm:$0xff]  }
 0x261   :  { %826 = vmatprep.subr.bf16.mxu0 %v1536_v55 }
 0x262   :  { %v667_v12 = vadd.f32 %v666_v11, %v665_v10  ;;  %v1265_v11 = vld [vmem:[#allocation11 + $0xd] ss:$0 sm:$0xff] }
 0x264   :  { %v668_v13 = vrot.slane %v667_v12, 1  ;;  %827 = vmatpush1.bf16.msra.mxu0 %v1534_v56 }
 0x265   :  { %828 = vmatprep.subr.bf16.mxu0 %v1539_v58 }
 0x266   :  { %v669_v14 = vadd.f32 %v668_v13, %v667_v12 }
 0x268   :  { %v670_v15 = vmul.f32 0.125, %v669_v14  ;;  %829 = vmatpush1.bf16.msra.mxu0 %v1537_v57 }
 0x269   :  { %830 = vmatprep.subr.bf16.mxu0 %v1542_v59 }
 0x26a   :  { %v671_v17 = vadd.f32 1e-05, %v670_v15  ;;  %v1282_v15 = vld [vmem:[#allocation11 + $0xe] ss:$0 sm:$0xff] }
 0x26c   :  { %1574 = vrsqrt.f32 %v671_v17  ;;  %831 = vmatpush1.bf16.msra.mxu0 %v1540_v60  ;;  %v1285_v17 = vld [vmem:[#allocation11 + $0x14] ss:$0 sm:$0xff]  ;;  %v1283_v60 = vld [vmem:[#allocation11 + $0xf] ss:$0 sm:$0xff] }
 0x26d   :  { %1576 = vpow2.f32 %v1262_v23  ;;  %832 = vmatprep.subr.bf16.mxu0 %v1545_v61 }
 0x270   :  { %833 = vmatpush1.bf16.msra.mxu0 %v1543_v63 }
 0x271   :  { %834 = vmatprep.subr.bf16.mxu0 %v1548_v1 }
 0x274   :  { %835 = vmatpush1.bf16.msra.mxu0 %v1546_v2  ;;  %v1286_v2 = vld [vmem:[#allocation11 + $0x15] ss:$0 sm:$0xff] }
 0x275   :  { %836 = vmatprep.subr.bf16.mxu0 %v1551_v3 }
 0x278   :  { %837 = vmatpush1.bf16.msra.mxu0 %v1549_v4 }
 0x279   :  { %v1575_v24 = vpop.eup %1574  ;;  %1464 = vmatprep.subr.bf16.mxu0 %v1752_v0 }
 0x27a   :  { %v673_v26 = vmul.f32 %v1575_v24, %v662_v7  ;;  %v1577_v31 = vpop.eup %1576 }
 0x27b   :  { %v687_v32 = vadd.f32 1.0, %v1577_v31 }
 0x27c   :  { %v678_v28 = vmul.f32 %v1260_v25, %v673_v26  ;;  %v1552_v26 = vld [vmem:[#allocation10 + $0x70] ss:$8 sps:$4 sm:$0xff]  }
 0x27d   :  { %1445 = vmatpush3.bf16.msra.mxu1 %v1552_v26 }
 0x27e   :  { %v683_v29 = vadd.f32 %v1261_v27, %v678_v28  ;;  %v1554_v27 = vld [vmem:[#allocation10 + $0x74] ss:$8 sps:$4 sm:$0xff]   ;;  %v1553_v28 = vld [vmem:[#allocation10 + $0x60] ss:$8 sps:$4 sm:$0xff]   ;;  %1446 = vmatprep.subr.bf16.mxu1 %v1752_v0 }
 0x280   :  { %v1263_v30 = vmul.f32 -1.442695, %v683_v29 }
 0x281   :  { %1447 = vmatpush3.bf16.msra.mxu1 %v1553_v28 }
 0x282   :  { %1578 = vpow2.f32 %v1263_v30  ;;  %1448 = vmatprep.subr.bf16.mxu1 %v1752_v0 }
 0x283   :  { %1580 = vrcp.f32 %v687_v32 }
 0x28f   :  { %v1579_v33 = vpop.eup %1578 }
 0x290   :  { %v694_v34 = vadd.f32 1.0, %v1579_v33  ;;  %v1581_v37 = vpop.eup %1580 }
 0x291   :  { %v690_v39 = vmul.f32 2.9, %v1581_v37 }
 0x292   :  { %1582 = vrcp.f32 %v694_v34 }
 0x29f   :  { %v1583_v38 = vpop.eup %1582 }
 0x2a0   :  { %v697_v40 = vmul.f32 2.9, %v1583_v38 }
 0x2a2   :  { %v698_v42 = vadd.f32 %v697_v40, %v690_v39  ;;  %v1555_v40 = vld [vmem:[#allocation10 + $0x50] ss:$8 sps:$4 sm:$0xff]  }
 0x2a3   :  { %1449 = vmatpush3.bf16.msra.mxu1 %v1555_v40 }
 0x2a4   :  { %v699_v44 = vadd.f32 %v698_v42, %v120_v41  ;;  %v1556_v41 = vld [vmem:[#allocation10 + $0x64] ss:$8 sps:$4 sm:$0xff]   ;;  %1450 = vmatprep.subr.bf16.mxu1 %v1752_v0  ;;  %v1557_v42 = vld [vmem:[#allocation10 + $0x40] ss:$8 sps:$4 sm:$0xff]  }
 0x2a6   :  { %v702_v45 = vmul.f32 %v1216_v43, %v699_v44 }
 0x2a7   :  { %1451 = vmatpush3.bf16.msra.mxu1 %v1557_v42 }
 0x2a8   :  { %703 = vadd.xlane.f32.xlu0 %v702_v45  ;;  %1452 = vmatprep.subr.bf16.mxu1 %v1752_v0  ;;  %v1560_v45 = vld [vmem:[#allocation10 + $0x44] ss:$8 sps:$4 sm:$0xff]  }
 0x331   :  { %v704_v50 = vpop.xlane.xlu0 %703 }
 0x332   :  { %v705_v51 = vmul.f32 0.0625, %v704_v50  ;;  %v1565_v50 = vld [vmem:[#allocation10] ss:$8 sps:$4 sm:$0xff]  }
 0x334   :  { %v706_v52 = vsub.f32 %v699_v44, %v705_v51  ;;  %v1559_v44 = vld [vmem:[#allocation10 + $0x30] ss:$8 sps:$4 sm:$0xff]   ;;  %v1566_v51 = vld [vmem:[#allocation10 + $0x14] ss:$8 sps:$4 sm:$0xff]  }
 0x335   :  { %1453 = vmatpush3.bf16.msra.mxu1 %v1559_v44 }
 0x336   :  { %v707_v53 = vmul.f32 %v1216_v43, %v706_v52  ;;  %v1558_v43 = vld [vmem:[#allocation10 + $0x54] ss:$8 sps:$4 sm:$0xff]   ;;  %1454 = vmatprep.subr.bf16.mxu1 %v1752_v0 }
 0x338   :  { %v708_v54 = vmul.f32 %v707_v53, %v707_v53 }
 0x339   :  { %1455 = vmatpush3.bf16.msra.mxu1 %v1561_v46  ;;  %v1308_v46 = vld [vmem:[#allocation11 + $0x18] ss:$0 sm:$0xff] }
 0x33a   :  { %709 = vadd.xlane.f32.xlu0 %v708_v54  ;;  %1456 = vmatprep.subr.bf16.mxu1 %v1752_v0 }
 0x33d   :  { %1457 = vmatpush3.bf16.msra.mxu1 %v1563_v48 }
 0x33e   :  { %1458 = vmatprep.subr.bf16.mxu1 %v1752_v0 }
 0x341   :  { %1459 = vmatpush3.bf16.msra.mxu1 %v1565_v50 }
 0x3c3   :  { %v710_v5 = vpop.xlane.xlu0 %709 }
 0x3c4   :  { %v711_v6 = vmul.f32 0.0625, %v710_v5  ;;  %v1287_v5 = vld [vmem:[#allocation11 + $0x16] ss:$0 sm:$0xff] }
 0x3c6   :  { %v712_v7 = vadd.f32 1e-05, %v711_v6 }
 0x3c8   :  { %1584 = vrsqrt.f32 %v712_v7 }
 0x3d5   :  { %v1585_v8 = vpop.eup %1584 }
 0x3d6   :  { %v714_v10 = vmul.f32 %v1585_v8, %v706_v52  ;;  %v1567_v52 = vld [vmem:[#allocation10 + $0x4] ss:$8 sps:$4 sm:$0xff]  }
 0x3d8   :  { %v719_v12 = vmul.f32 %v1264_v9, %v714_v10  ;;  %v1288_v10 = vld [vmem:[#allocation11 + $0x11] ss:$0 sm:$0xff] }
 0x3da   :  { %v724_v13 = vadd.f32 %v1265_v11, %v719_v12  ;;  %v1217_v12 = vsel %vm113_vm3, 1.0, %v1752_v0 }
 0x3dc   :  { %v725_v14 = vpack.c.bf16 %v724_v13, %v724_v13 }
 0x3de   :  { %855 = vmatmul.mubr.bf16.vlgmr.msra.gmra.mxu0 %v725_v14 }
 0x3df   :  { %1480 = vmatprep.mubr.msk.bf16.mxu0 %vm1753_vm0, %v1752_v0  ;;  %1465 = vmatpush3.bf16.msra.mxu0 %v1554_v27 }
 0x3e0   :  { %1466 = vmatprep.subr.bf16.mxu0 %v1752_v0 }
 0x3e3   :  { %1467 = vmatpush3.bf16.msra.mxu0 %v1556_v41  ;;  %v1306_v41 = vld [vmem:[#allocation11 + $0x12] ss:$0 sm:$0xff] }
 0x3e4   :  { %1468 = vmatprep.subr.bf16.mxu0 %v1752_v0 }
 0x3e7   :  { %1469 = vmatpush3.bf16.msra.mxu0 %v1558_v43  ;;  %v1307_v43 = vld [vmem:[#allocation11 + $0x13] ss:$0 sm:$0xff] }
 0x3e8   :  { %1470 = vmatprep.subr.bf16.mxu0 %v1752_v0 }
 0x3eb   :  { %1471 = vmatpush3.bf16.msra.mxu0 %v1560_v45 }
 0x3ec   :  { %1472 = vmatprep.subr.bf16.mxu0 %v1752_v0 }
 0x3ef   :  { %1473 = vmatpush3.bf16.msra.mxu0 %v1562_v47 }
 0x3f0   :  { %1474 = vmatprep.subr.bf16.mxu0 %v1752_v0 }
 0x3f3   :  { %1475 = vmatpush3.bf16.msra.mxu0 %v1564_v49  ;;  %v1309_v49 = vld [vmem:[#allocation11 + $0x19] ss:$0 sm:$0xff] }
 0x3f4   :  { %1476 = vmatprep.subr.bf16.mxu0 %v1752_v0 }
 0x3f7   :  { %1477 = vmatpush3.bf16.msra.mxu0 %v1566_v51 }
 0x3f8   :  { %1478 = vmatprep.subr.bf16.mxu0 %v1752_v0 }
 0x3fb   :  { %1479 = vmatpush3.bf16.msra.mxu0 %v1567_v52 }
 0x49e   :  { %v856_v16 = vpop.f32.mrf.mxu0 }
 0x49f   :  { %v868_v19 = vadd.f32 %v1282_v15, %v856_v16  ;;  %v1297_v15 = vld [vmem:[#allocation11 + $0x17] ss:$0 sm:$0xff] }
 0x4a0   :  { %v858_v20 = vpop.f32.mrf.mxu0 }
 0x4a1   :  { %v899_v21 = vadd.f32 %v1285_v17, %v858_v20  ;;  %v871_v22 = vmul.f32 %v1215_v18, %v868_v19 }
 0x4a2   :  { %v860_v23 = vpop.f32.mrf.mxu0 }
 0x4a3   :  { %872 = vadd.xlane.f32.xlu1 %v871_v22  ;;  %v902_v25 = vmul.f32 %v1215_v18, %v899_v21 }
 0x4a4   :  { %v861_v24 = vpop.f32.mrf.mxu0 }
 0x4a7   :  { %903 = vadd.xlane.f32.xlu1 %v902_v25 }
 0x52c   :  { %v873_v29 = vpop.xlane.xlu1 %872 }
 0x52d   :  { %v874_v30 = vmul.f32 0.01, %v873_v29 }
 0x52f   :  { %v875_v31 = vsub.f32 %v868_v19, %v874_v30 }
 0x530   :  { %v904_v32 = vpop.xlane.xlu1 %903 }
 0x531   :  { %v905_v33 = vmul.f32 0.01, %v904_v32  ;;  %v876_v34 = vmul.f32 %v1215_v18, %v875_v31 }
 0x533   :  { %v906_v35 = vsub.f32 %v899_v21, %v905_v33  ;;  %v877_v37 = vmul.f32 %v876_v34, %v876_v34 }
 0x535   :  { %878 = vadd.xlane.f32.xlu0 %v877_v37  ;;  %v907_v38 = vmul.f32 %v1215_v18, %v906_v35 }
 0x537   :  { %v908_v39 = vmul.f32 %v907_v38, %v907_v38 }
 0x539   :  { %909 = vadd.xlane.f32.xlu1 %v908_v39 }
 0x5be   :  { %v879_v53 = vpop.xlane.xlu0 %878 }
 0x5bf   :  { %v880_v54 = vmul.f32 0.01, %v879_v53 }
 0x5c1   :  { %v881_v55 = vadd.f32 1e-05, %v880_v54 }
 0x5c2   :  { %v910_v56 = vpop.xlane.xlu1 %909 }
 0x5c3   :  { %1586 = vrsqrt.f32 %v881_v55  ;;  %v911_v57 = vmul.f32 0.01, %v910_v56 }
 0x5c5   :  { %v912_v58 = vadd.f32 1e-05, %v911_v57 }
 0x5c7   :  { %1588 = vrsqrt.f32 %v912_v58 }
 0x5d0   :  { %v1587_v59 = vpop.eup %1586 }
 0x5d1   :  { %v883_v61 = vmul.f32 %v1587_v59, %v875_v31 }
 0x5d3   :  { %v888_v63 = vmul.f32 %v1283_v60, %v883_v61 }
 0x5d4   :  { %v1589_v1 = vpop.eup %1588 }
 0x5d5   :  { %v893_v3 = vadd.f32 %v1284_v62, %v888_v63  ;;  %v914_v4 = vmul.f32 %v1589_v1, %v906_v35 }
 0x5d7   :  { %v925_v6 = vpack.c.bf16 %v893_v3, %v893_v3  ;;  %v919_v7 = vmul.f32 %v1286_v2, %v914_v4 }
 0x5d9   :  { %1461 = vmatmul.mubr.bf16.vlgmr.msra.gmra.mxu1 %v925_v6  ;;  %v924_v8 = vadd.f32 %v1287_v5, %v919_v7 }
 0x5db   :  { %v1035_v9 = vpack.c.bf16 %v924_v8, %v924_v8 }
 0x5dd   :  { %1481 = vmatmul.mubr.bf16.vlgmr.msra.gmra.mxu0 %v1035_v9 }
 0x699   :  { %v1029_v11 = vpop.f32.mrf.mxu1 }
 0x69a   :  { %v1030_v13 = vadd.f32 %v1288_v10, %v1029_v11 }
 0x69b   :  { %v1462_v14 = vpop.f32.mrf.mxu1 }
 0x69c   :  { %v1147_v16 = vmul.f32 %v1217_v12, %v1030_v13 }
 0x69d   :  { %v1032_v17 = vpop.f32.mrf.mxu1  ;;  %v1139_v18 = vpop.f32.mrf.mxu0 }
 0x69e   :  { %v1140_v19 = vadd.f32 %v1297_v15, %v1139_v18  ;;  %1148 = vadd.xlane.f32.xlu0 %v1147_v16 }
 0x69f   :  { %v1463_v20 = vpop.f32.mrf.mxu1  ;;  %v1482_v21 = vpop.f32.mrf.mxu0 }
 0x6a0   :  { %v1173_v22 = vmul.f32 %v1217_v12, %v1140_v19 }
 0x6a1   :  { %v1142_v23 = vpop.f32.mrf.mxu0 }
 0x6a2   :  { %1174 = vadd.xlane.f32.xlu1 %v1173_v22 }
 0x6a3   :  { %v1483_v24 = vpop.f32.mrf.mxu0 }
 0x727   :  { %v1149_v25 = vpop.xlane.xlu0 %1148 }
 0x728   :  { %v1150_v36 = vmul.f32 0.03125, %v1149_v25 }
 0x72a   :  { %v1151_v26 = vsub.f32 %v1030_v13, %v1150_v36 }
 0x72b   :  { %v1175_v27 = vpop.xlane.xlu1 %1174 }
 0x72c   :  { %v1176_v28 = vmul.f32 0.03125, %v1175_v27  ;;  %v1152_v0 = vmul.f32 %v1217_v12, %v1151_v26 }
 0x72e   :  { %v1177_v29 = vsub.f32 %v1140_v19, %v1176_v28  ;;  %v1153_v30 = vmul.f32 %v1152_v0, %v1152_v0 }
 0x730   :  { %1154 = vadd.xlane.f32.xlu0 %v1153_v30  ;;  %v1178_v31 = vmul.f32 %v1217_v12, %v1177_v29 }
 0x732   :  { %v1179_v32 = vmul.f32 %v1178_v31, %v1178_v31 }
 0x734   :  { %1180 = vadd.xlane.f32.xlu1 %v1179_v32 }
 0x7b9   :  { %v1155_v33 = vpop.xlane.xlu0 %1154 }
 0x7ba   :  { %v1156_v34 = vmul.f32 0.03125, %v1155_v33 }
 0x7bc   :  { %v1157_v35 = vadd.f32 1e-05, %v1156_v34 }
 0x7bd   :  { %v1181_v37 = vpop.xlane.xlu1 %1180 }
 0x7be   :  { %1590 = vrsqrt.f32 %v1157_v35  ;;  %v1182_v38 = vmul.f32 0.03125, %v1181_v37 }
 0x7c0   :  { %v1183_v39 = vadd.f32 1e-05, %v1182_v38 }
 0x7c2   :  { %1592 = vrsqrt.f32 %v1183_v39 }
 0x7cb   :  { %v1591_v40 = vpop.eup %1590 }
 0x7cc   :  { %v1159_v42 = vmul.f32 %v1591_v40, %v1151_v26 }
 0x7ce   :  { %v1164_v44 = vmul.f32 %v1306_v41, %v1159_v42 }
 0x7cf   :  { %v1593_v45 = vpop.eup %1592 }
 0x7d0   :  { %v1169_v47 = vadd.f32 %v1307_v43, %v1164_v44  ;;  %v1185_v48 = vmul.f32 %v1593_v45, %v1177_v29 }
 0x7d2   :  { %1170 = vst [vmem:[#allocation13] sm:$0xff] %v1169_v47  ;;  %v1190_v50 = vmul.f32 %v1308_v46, %v1185_v48 }
 0x7d4   :  { %v1195_v51 = vadd.f32 %v1309_v49, %v1190_v50 }
 0x7d6   :  { %1196 = vst [vmem:[#allocation13 + $0x8] sm:$0xff] %v1195_v51 }
 0x7d7   :  { %1725 = shalt.err (!%p1722_p6)
}
 0x7d8   :  { %1206 = dma.vmem_to_hbm [thread:$0]  %s1204_s5, 256, %s1901_s6, [#allocation4]  }
 0x7d9   :  { %1742 = dma.done.wait [#allocation4], 256  }
 0x7da   :  { %1743 = vsyncadd [#allocation4], 4294967040 }
 0x7db   :  { %1210 = vsyncpa [#allocation3], 1 }
 0x7dc   :  { %1211 = vsyncpa [#allocation6], 1 }
 0x7dd   :  { %1212 = vsyncpa [#allocation9], 1 }
 0x7de   :  { %1213 = vsyncpa [#allocation12], 1 }
 0x7df   :  { %1214 = vsyncpa [#allocation4], 1 }

</bundles_post_ra>
